<compile_context>
chip_gen: v5e
topology: v5e:2x2
jax: 0.10.0
libtpu: 0.0.40
codegen_flags: <defaults>
</compile_context>

<pallas_src>
import functools
from math import sqrt

import jax
import jax.numpy as jnp
from jax.experimental import pallas as pl
from jax.experimental.pallas import tpu as pltpu

# ---- small synthetic hparams ------------------------------------------------
N_MEL = 8          # hparams.n_mel_channels
EMB = 32           # hparams.postnet_embedding_dim
KSIZE = 5          # hparams.postnet_kernel_size
N_CONVS = 5        # hparams.postnet_n_convolutions
PAD = (KSIZE - 1) // 2
BN_EPS = 1e-5
HALO = PAD * N_CONVS                 # receptive-field halo of the fused stack
DIMS = [N_MEL] + [EMB] * (N_CONVS - 1) + [N_MEL]


# ---- fused Pallas kernel: all 5 ConvNorm+BN(+tanh) layers for one L tile -----
def _postnet_kernel(*refs, L, L_TILE):
    # refs = [x_ref, w0..w4, b0..b4, o_ref]
    #   x_ref : (N_MEL, L + 2*HALO)      halo-padded input, one batch element
    #   w_l   : (K, Cout_l, Cin_l) bf16  BN-scale-folded conv weights
    #   b_l   : (Cout_l, 1)        f32   folded conv-bias + BN bias
    #   o_ref : (N_MEL, L_TILE)
    x_ref = refs[0]
    w_refs = refs[1:1 + N_CONVS]
    b_refs = refs[1 + N_CONVS:1 + 2 * N_CONVS]
    o_ref = refs[1 + 2 * N_CONVS]

    f32 = jnp.float32
    t = pl.program_id(1)
    base = pl.multiple_of(t * L_TILE, L_TILE)        # 128-aligned lane offset

    width = L_TILE + 2 * HALO                        # layer-0 input window
    act = x_ref[:, pl.ds(base, width)].astype(f32)   # (N_MEL, L_TILE + 2*HALO)

    for l in range(N_CONVS):                         # static unroll over layers
        cout = DIMS[l + 1]
        w_out = width - 2 * PAD
        a = act.astype(jnp.bfloat16)                 # MXU-native input dtype
        acc = jnp.zeros((cout, w_out), f32)
        for k in range(KSIZE):                       # K accumulated MXU matmuls
            acc = acc + jnp.dot(w_refs[l][k], a[:, k:k + w_out],
                                preferred_element_type=f32)
        y = acc + b_refs[l][...]                     # folded conv-bias + BN bias
        if l < N_CONVS - 1:
            y = jnp.tanh(y)
            # Zero positions outside the original [0, L): reproduces the
            # per-layer zero padding of the reference at sequence boundaries
            # (halo positions inside [0, L) are exact recomputed neighbors).
            start = t * L_TILE - PAD * (N_CONVS - 1 - l)
            pos = start + jax.lax.broadcasted_iota(jnp.int32, (1, w_out), 1)
            y = jnp.where((pos >= 0) & (pos < L), y, 0.0)
        # dropout(0.5, training=False) == identity
        act = y
        width = w_out

    o_ref[...] = act.astype(o_ref.dtype)             # lane-dense (N_MEL, 128)


def postnet_forward(x_ncl, weights, biases, *, l_tile=128):
    """x_ncl: (B, n_mel_channels, L) -- PyTorch Conv1d NCL layout, L % 128 == 0."""
    B, c_in, L = x_ncl.shape
    assert c_in == N_MEL and L % l_tile == 0
    nt = L // l_tile

    # Only the tiny n_mel-channel raw input gets a one-time halo pad in HBM;
    # all intermediate activations stay in VMEM/vregs inside the kernel.
    x_pad = jnp.pad(x_ncl, ((0, 0), (0, 0), (HALO, HALO)))

    flops = 2 * B * L * KSIZE * sum(ci * co for ci, co in zip(DIMS[:-1], DIMS[1:]))
    transcendentals = B * L * sum(DIMS[1:-1])             # tanh on layers 0..3
    bytes_accessed = (4 * x_pad.size + 4 * B * N_MEL * L
                      + sum(2 * w.size for w in weights)
                      + sum(4 * b.size for b in biases))

    kernel = functools.partial(_postnet_kernel, L=L, L_TILE=l_tile)
    w_specs = [pl.BlockSpec(w.shape, lambda b, t: (0, 0, 0)) for w in weights]
    b_specs = [pl.BlockSpec(bb.shape, lambda b, t: (0, 0)) for bb in biases]

    return pl.pallas_call(
        kernel,
        out_shape=jax.ShapeDtypeStruct((B, N_MEL, L), x_ncl.dtype),
        grid_spec=pltpu.PrefetchScalarGridSpec(
            num_scalar_prefetch=0,
            grid=(B, nt),
            in_specs=[pl.BlockSpec((None, N_MEL, L + 2 * HALO),
                                   lambda b, t: (b, 0, 0))] + w_specs + b_specs,
            out_specs=pl.BlockSpec((None, N_MEL, l_tile), lambda b, t: (b, 0, t)),
        ),
        compiler_params=pltpu.CompilerParams(
            dimension_semantics=("parallel", "parallel"),
            vmem_limit_bytes=32 * 1024 * 1024),
        cost_estimate=pl.CostEstimate(flops=flops,
                                      transcendentals=transcendentals,
                                      bytes_accessed=bytes_accessed),
    )(x_pad, *weights, *biases)


# ---- parameter construction (deterministic, BN folded into W, bf16 pack) -----
def make_params(key):
    keys = jax.random.split(key, N_CONVS)
    weights_bf16, weights_f32, biases = [], [], []
    for i in range(N_CONVS):
        cin, cout = DIMS[i], DIMS[i + 1]
        kk = jax.random.split(keys[i], 6)
        # xavier_uniform with gain: tanh for layers 0..3, linear for the last
        gain = 5.0 / 3.0 if i < N_CONVS - 1 else 1.0
        bound = gain * sqrt(6.0 / (cin * KSIZE + cout * KSIZE))
        w = jax.random.uniform(kk[0], (cout, KSIZE, cin), jnp.float32,
                               -bound, bound)
        b_conv = jax.random.uniform(kk[1], (cout,), jnp.float32, -0.1, 0.1)
        gamma = 1.0 + 0.1 * jax.random.normal(kk[2], (cout,), jnp.float32)
        beta = 0.1 * jax.random.normal(kk[3], (cout,), jnp.float32)
        rmean = 0.1 * jax.random.normal(kk[4], (cout,), jnp.float32)
        rvar = jnp.abs(1.0 + 0.1 * jax.random.normal(kk[5], (cout,), jnp.float32))
        s = gamma / jnp.sqrt(rvar + BN_EPS)          # eval-mode BN scale
        w_folded = w * s[:, None, None]              # fold BN scale into W
        bias_folded = (b_conv - rmean) * s + beta    # folded conv-bias + BN bias
        w_kf = jnp.transpose(w_folded, (1, 0, 2))    # (K, Cout, Cin)
        weights_f32.append(w_kf)
        weights_bf16.append(w_kf.astype(jnp.bfloat16))
        biases.append(bias_folded.reshape(cout, 1))
    return weights_bf16, weights_f32, biases


# ---- pure-JAX reference -------------------------------------------------------
def ref_forward(x_ncl, weights, biases):
    """Module-faithful forward; conv operands are cast to weights' dtype with
    f32 accumulation (so bf16 weights reproduce the kernel's numerics)."""
    act = x_ncl.astype(jnp.float32)
    for i in range(N_CONVS):
        w, bias = weights[i], biases[i]              # (K, Cout, Cin), (Cout, 1)
        B, cin, L = act.shape
        cout = w.shape[1]
        xp = jnp.pad(act, ((0, 0), (0, 0), (PAD, PAD))).astype(w.dtype)
        acc = jnp.zeros((B, cout, L), jnp.float32)
        for k in range(KSIZE):
            acc = acc + jnp.einsum("oc,bct->bot", w[k], xp[:, :, k:k + L],
                                   preferred_element_type=jnp.float32)
        y = acc + bias[None]
        if i < N_CONVS - 1:
            y = jnp.tanh(y)
        act = y
    return act


if __name__ == "__main__":
    key = jax.random.PRNGKey(0)
    k_param, k_x = jax.random.split(key)
    weights_bf16, weights_f32, biases = make_params(k_param)

    B, L = 2, 256                                    # L is a multiple of 128
    x = jax.random.normal(k_x, (B, N_MEL, L), jnp.float32)

    out = jax.block_until_ready(postnet_forward(x, weights_bf16, biases))
    assert out.shape == (B, N_MEL, L)

    # Exact-numerics reference (same bf16 weights / bf16 MXU inputs, f32 accum).
    ref_bf16 = ref_forward(x, weights_bf16, biases)
    assert jnp.allclose(out, ref_bf16, atol=5e-3, rtol=1e-3), "mismatch vs bf16 ref"

    # Module-faithful full-f32 reference (loose tol covers bf16 weight storage).
    ref_f32 = ref_forward(x, weights_f32, biases)
    assert jnp.allclose(out, ref_f32, atol=1e-1, rtol=1e-1), "mismatch vs f32 ref"

    print("KERNEL_OK")
</pallas_src>

<mosaic_0001>
module attributes {stable_mosaic.version = 11 : i64} {
  func.func @_postnet_kernel(%arg0: i32, %arg1: i32, %arg2: memref<1x8x276xf32, #tpu.memory_space<vmem>>, %arg3: memref<5x32x8xbf16, #tpu.memory_space<vmem>>, %arg4: memref<5x32x32xbf16, #tpu.memory_space<vmem>>, %arg5: memref<5x32x32xbf16, #tpu.memory_space<vmem>>, %arg6: memref<5x32x32xbf16, #tpu.memory_space<vmem>>, %arg7: memref<5x8x32xbf16, #tpu.memory_space<vmem>>, %arg8: memref<32x1xf32, #tpu.memory_space<vmem>>, %arg9: memref<32x1xf32, #tpu.memory_space<vmem>>, %arg10: memref<32x1xf32, #tpu.memory_space<vmem>>, %arg11: memref<32x1xf32, #tpu.memory_space<vmem>>, %arg12: memref<8x1xf32, #tpu.memory_space<vmem>>, %arg13: memref<1x8x128xf32, #tpu.memory_space<vmem>>) attributes {dimension_semantics = [#tpu.dimension_semantics<parallel>, #tpu.dimension_semantics<parallel>], iteration_bounds = array<i64: 2, 2>, scalar_prefetch = 0 : i64, scratch_operands = 0 : i64, tpu.core_type = #tpu.core_type<tc>, window_params = [{transform_indices = @transform_0, window_bounds = array<i64: 1, 8, 276>}, {pipeline_mode = #tpu.pipeline_mode<synchronous>, transform_indices = @transform_1, window_bounds = array<i64: 5, 32, 8>}, {pipeline_mode = #tpu.pipeline_mode<synchronous>, transform_indices = @transform_2, window_bounds = array<i64: 5, 32, 32>}, {pipeline_mode = #tpu.pipeline_mode<synchronous>, transform_indices = @transform_3, window_bounds = array<i64: 5, 32, 32>}, {pipeline_mode = #tpu.pipeline_mode<synchronous>, transform_indices = @transform_4, window_bounds = array<i64: 5, 32, 32>}, {pipeline_mode = #tpu.pipeline_mode<synchronous>, transform_indices = @transform_5, window_bounds = array<i64: 5, 8, 32>}, {pipeline_mode = #tpu.pipeline_mode<synchronous>, transform_indices = @transform_6, window_bounds = array<i64: 32, 1>}, {pipeline_mode = #tpu.pipeline_mode<synchronous>, transform_indices = @transform_7, window_bounds = array<i64: 32, 1>}, {pipeline_mode = #tpu.pipeline_mode<synchronous>, transform_indices = @transform_8, window_bounds = array<i64: 32, 1>}, {pipeline_mode = #tpu.pipeline_mode<synchronous>, transform_indices = @transform_9, window_bounds = array<i64: 32, 1>}, {pipeline_mode = #tpu.pipeline_mode<synchronous>, transform_indices = @transform_10, window_bounds = array<i64: 8, 1>}, {transform_indices = @transform_11, window_bounds = array<i64: 1, 8, 128>}]} {
    %c128_i32 = arith.constant 128 : i32
    %0 = arith.muli %arg1, %c128_i32 : i32
    %1 = tpu.assume_multiple %0, 128 : i32
    %c0 = arith.constant 0 : index
    %c0_0 = arith.constant 0 : index
    %2 = arith.index_cast %1 : i32 to index
    %3 = vector.load %arg2[%c0, %c0_0, %2] : memref<1x8x276xf32, #tpu.memory_space<vmem>>, vector<1x8x148xf32>
    %4 = vector.shape_cast %3 : vector<1x8x148xf32> to vector<8x148xf32>
    %5 = arith.truncf %4 : vector<8x148xf32> to vector<8x148xbf16>
    %cst = arith.constant 0.000000e+00 : f32
    %6 = vector.broadcast %cst : f32 to vector<32x144xf32>
    %c0_1 = arith.constant 0 : index
    %c0_2 = arith.constant 0 : index
    %c0_3 = arith.constant 0 : index
    %7 = vector.load %arg3[%c0_1, %c0_2, %c0_3] : memref<5x32x8xbf16, #tpu.memory_space<vmem>>, vector<1x32x8xbf16>
    %8 = vector.shape_cast %7 : vector<1x32x8xbf16> to vector<32x8xbf16>
    %9 = vector.extract_strided_slice %5 {offsets = [0, 0], sizes = [8, 144], strides = [1, 1]} : vector<8x148xbf16> to vector<8x144xbf16>
    %cst_4 = arith.constant dense<0.000000e+00> : vector<32x144xf32>
    %10 = tpu.matmul %8, %9, %cst_4 {dimension_numbers = #tpu.dot_dimension_numbers<[1], [0], [0], [1], [0, 0, 1, 1], [], []>} : vector<32x8xbf16>, vector<8x144xbf16>, vector<32x144xf32> -> vector<32x144xf32>
    %11 = arith.addf %6, %10 : vector<32x144xf32>
    %c1 = arith.constant 1 : index
    %c0_5 = arith.constant 0 : index
    %c0_6 = arith.constant 0 : index
    %12 = vector.load %arg3[%c1, %c0_5, %c0_6] : memref<5x32x8xbf16, #tpu.memory_space<vmem>>, vector<1x32x8xbf16>
    %13 = vector.shape_cast %12 : vector<1x32x8xbf16> to vector<32x8xbf16>
    %14 = vector.extract_strided_slice %5 {offsets = [0, 1], sizes = [8, 144], strides = [1, 1]} : vector<8x148xbf16> to vector<8x144xbf16>
    %cst_7 = arith.constant dense<0.000000e+00> : vector<32x144xf32>
    %15 = tpu.matmul %13, %14, %cst_7 {dimension_numbers = #tpu.dot_dimension_numbers<[1], [0], [0], [1], [0, 0, 1, 1], [], []>} : vector<32x8xbf16>, vector<8x144xbf16>, vector<32x144xf32> -> vector<32x144xf32>
    %16 = arith.addf %11, %15 : vector<32x144xf32>
    %c2 = arith.constant 2 : index
    %c0_8 = arith.constant 0 : index
    %c0_9 = arith.constant 0 : index
    %17 = vector.load %arg3[%c2, %c0_8, %c0_9] : memref<5x32x8xbf16, #tpu.memory_space<vmem>>, vector<1x32x8xbf16>
    %18 = vector.shape_cast %17 : vector<1x32x8xbf16> to vector<32x8xbf16>
    %19 = vector.extract_strided_slice %5 {offsets = [0, 2], sizes = [8, 144], strides = [1, 1]} : vector<8x148xbf16> to vector<8x144xbf16>
    %cst_10 = arith.constant dense<0.000000e+00> : vector<32x144xf32>
    %20 = tpu.matmul %18, %19, %cst_10 {dimension_numbers = #tpu.dot_dimension_numbers<[1], [0], [0], [1], [0, 0, 1, 1], [], []>} : vector<32x8xbf16>, vector<8x144xbf16>, vector<32x144xf32> -> vector<32x144xf32>
    %21 = arith.addf %16, %20 : vector<32x144xf32>
    %c3 = arith.constant 3 : index
    %c0_11 = arith.constant 0 : index
    %c0_12 = arith.constant 0 : index
    %22 = vector.load %arg3[%c3, %c0_11, %c0_12] : memref<5x32x8xbf16, #tpu.memory_space<vmem>>, vector<1x32x8xbf16>
    %23 = vector.shape_cast %22 : vector<1x32x8xbf16> to vector<32x8xbf16>
    %24 = vector.extract_strided_slice %5 {offsets = [0, 3], sizes = [8, 144], strides = [1, 1]} : vector<8x148xbf16> to vector<8x144xbf16>
    %cst_13 = arith.constant dense<0.000000e+00> : vector<32x144xf32>
    %25 = tpu.matmul %23, %24, %cst_13 {dimension_numbers = #tpu.dot_dimension_numbers<[1], [0], [0], [1], [0, 0, 1, 1], [], []>} : vector<32x8xbf16>, vector<8x144xbf16>, vector<32x144xf32> -> vector<32x144xf32>
    %26 = arith.addf %21, %25 : vector<32x144xf32>
    %c4 = arith.constant 4 : index
    %c0_14 = arith.constant 0 : index
    %c0_15 = arith.constant 0 : index
    %27 = vector.load %arg3[%c4, %c0_14, %c0_15] : memref<5x32x8xbf16, #tpu.memory_space<vmem>>, vector<1x32x8xbf16>
    %28 = vector.shape_cast %27 : vector<1x32x8xbf16> to vector<32x8xbf16>
    %29 = vector.extract_strided_slice %5 {offsets = [0, 4], sizes = [8, 144], strides = [1, 1]} : vector<8x148xbf16> to vector<8x144xbf16>
    %cst_16 = arith.constant dense<0.000000e+00> : vector<32x144xf32>
    %30 = tpu.matmul %28, %29, %cst_16 {dimension_numbers = #tpu.dot_dimension_numbers<[1], [0], [0], [1], [0, 0, 1, 1], [], []>} : vector<32x8xbf16>, vector<8x144xbf16>, vector<32x144xf32> -> vector<32x144xf32>
    %31 = arith.addf %26, %30 : vector<32x144xf32>
    %c0_17 = arith.constant 0 : index
    %c0_18 = arith.constant 0 : index
    %32 = vector.load %arg8[%c0_17, %c0_18] : memref<32x1xf32, #tpu.memory_space<vmem>>, vector<32x1xf32>
    %33 = vector.broadcast %32 : vector<32x1xf32> to vector<32x144xf32>
    %34 = arith.addf %31, %33 : vector<32x144xf32>
    %35 = math.tanh %34 : vector<32x144xf32>
    %c128_i32_19 = arith.constant 128 : i32
    %36 = arith.muli %arg1, %c128_i32_19 : i32
    %c8_i32 = arith.constant 8 : i32
    %37 = arith.subi %36, %c8_i32 : i32
    %38 = tpu.iota {dimensions = array<i32: 1>} : vector<1x144xi32>
    %39 = vector.broadcast %37 : i32 to vector<1x144xi32>
    %40 = arith.addi %39, %38 : vector<1x144xi32>
    %c0_i32 = arith.constant 0 : i32
    %41 = vector.broadcast %c0_i32 : i32 to vector<1x144xi32>
    %42 = arith.cmpi sge, %40, %41 : vector<1x144xi32>
    %c256_i32 = arith.constant 256 : i32
    %43 = vector.broadcast %c256_i32 : i32 to vector<1x144xi32>
    %44 = arith.cmpi slt, %40, %43 : vector<1x144xi32>
    %45 = arith.andi %42, %44 : vector<1x144xi1>
    %cst_20 = arith.constant 0.000000e+00 : f32
    %46 = vector.shape_cast %45 : vector<1x144xi1> to vector<1x144xi1>
    %47 = vector.broadcast %46 : vector<1x144xi1> to vector<32x144xi1>
    %48 = vector.broadcast %cst_20 : f32 to vector<32x144xf32>
    %49 = arith.select %47, %35, %48 : vector<32x144xi1>, vector<32x144xf32>
    %50 = arith.truncf %49 : vector<32x144xf32> to vector<32x144xbf16>
    %cst_21 = arith.constant 0.000000e+00 : f32
    %51 = vector.broadcast %cst_21 : f32 to vector<32x140xf32>
    %c0_22 = arith.constant 0 : index
    %c0_23 = arith.constant 0 : index
    %c0_24 = arith.constant 0 : index
    %52 = vector.load %arg4[%c0_22, %c0_23, %c0_24] : memref<5x32x32xbf16, #tpu.memory_space<vmem>>, vector<1x32x32xbf16>
    %53 = vector.shape_cast %52 : vector<1x32x32xbf16> to vector<32x32xbf16>
    %54 = vector.extract_strided_slice %50 {offsets = [0, 0], sizes = [32, 140], strides = [1, 1]} : vector<32x144xbf16> to vector<32x140xbf16>
    %cst_25 = arith.constant dense<0.000000e+00> : vector<32x140xf32>
    %55 = tpu.matmul %53, %54, %cst_25 {dimension_numbers = #tpu.dot_dimension_numbers<[1], [0], [0], [1], [0, 0, 1, 1], [], []>} : vector<32x32xbf16>, vector<32x140xbf16>, vector<32x140xf32> -> vector<32x140xf32>
    %56 = arith.addf %51, %55 : vector<32x140xf32>
    %c1_26 = arith.constant 1 : index
    %c0_27 = arith.constant 0 : index
    %c0_28 = arith.constant 0 : index
    %57 = vector.load %arg4[%c1_26, %c0_27, %c0_28] : memref<5x32x32xbf16, #tpu.memory_space<vmem>>, vector<1x32x32xbf16>
    %58 = vector.shape_cast %57 : vector<1x32x32xbf16> to vector<32x32xbf16>
    %59 = vector.extract_strided_slice %50 {offsets = [0, 1], sizes = [32, 140], strides = [1, 1]} : vector<32x144xbf16> to vector<32x140xbf16>
    %cst_29 = arith.constant dense<0.000000e+00> : vector<32x140xf32>
    %60 = tpu.matmul %58, %59, %cst_29 {dimension_numbers = #tpu.dot_dimension_numbers<[1], [0], [0], [1], [0, 0, 1, 1], [], []>} : vector<32x32xbf16>, vector<32x140xbf16>, vector<32x140xf32> -> vector<32x140xf32>
    %61 = arith.addf %56, %60 : vector<32x140xf32>
    %c2_30 = arith.constant 2 : index
    %c0_31 = arith.constant 0 : index
    %c0_32 = arith.constant 0 : index
    %62 = vector.load %arg4[%c2_30, %c0_31, %c0_32] : memref<5x32x32xbf16, #tpu.memory_space<vmem>>, vector<1x32x32xbf16>
    %63 = vector.shape_cast %62 : vector<1x32x32xbf16> to vector<32x32xbf16>
    %64 = vector.extract_strided_slice %50 {offsets = [0, 2], sizes = [32, 140], strides = [1, 1]} : vector<32x144xbf16> to vector<32x140xbf16>
    %cst_33 = arith.constant dense<0.000000e+00> : vector<32x140xf32>
    %65 = tpu.matmul %63, %64, %cst_33 {dimension_numbers = #tpu.dot_dimension_numbers<[1], [0], [0], [1], [0, 0, 1, 1], [], []>} : vector<32x32xbf16>, vector<32x140xbf16>, vector<32x140xf32> -> vector<32x140xf32>
    %66 = arith.addf %61, %65 : vector<32x140xf32>
    %c3_34 = arith.constant 3 : index
    %c0_35 = arith.constant 0 : index
    %c0_36 = arith.constant 0 : index
    %67 = vector.load %arg4[%c3_34, %c0_35, %c0_36] : memref<5x32x32xbf16, #tpu.memory_space<vmem>>, vector<1x32x32xbf16>
    %68 = vector.shape_cast %67 : vector<1x32x32xbf16> to vector<32x32xbf16>
    %69 = vector.extract_strided_slice %50 {offsets = [0, 3], sizes = [32, 140], strides = [1, 1]} : vector<32x144xbf16> to vector<32x140xbf16>
    %cst_37 = arith.constant dense<0.000000e+00> : vector<32x140xf32>
    %70 = tpu.matmul %68, %69, %cst_37 {dimension_numbers = #tpu.dot_dimension_numbers<[1], [0], [0], [1], [0, 0, 1, 1], [], []>} : vector<32x32xbf16>, vector<32x140xbf16>, vector<32x140xf32> -> vector<32x140xf32>
    %71 = arith.addf %66, %70 : vector<32x140xf32>
    %c4_38 = arith.constant 4 : index
    %c0_39 = arith.constant 0 : index
    %c0_40 = arith.constant 0 : index
    %72 = vector.load %arg4[%c4_38, %c0_39, %c0_40] : memref<5x32x32xbf16, #tpu.memory_space<vmem>>, vector<1x32x32xbf16>
    %73 = vector.shape_cast %72 : vector<1x32x32xbf16> to vector<32x32xbf16>
    %74 = vector.extract_strided_slice %50 {offsets = [0, 4], sizes = [32, 140], strides = [1, 1]} : vector<32x144xbf16> to vector<32x140xbf16>
    %cst_41 = arith.constant dense<0.000000e+00> : vector<32x140xf32>
    %75 = tpu.matmul %73, %74, %cst_41 {dimension_numbers = #tpu.dot_dimension_numbers<[1], [0], [0], [1], [0, 0, 1, 1], [], []>} : vector<32x32xbf16>, vector<32x140xbf16>, vector<32x140xf32> -> vector<32x140xf32>
    %76 = arith.addf %71, %75 : vector<32x140xf32>
    %c0_42 = arith.constant 0 : index
    %c0_43 = arith.constant 0 : index
    %77 = vector.load %arg9[%c0_42, %c0_43] : memref<32x1xf32, #tpu.memory_space<vmem>>, vector<32x1xf32>
    %78 = vector.broadcast %77 : vector<32x1xf32> to vector<32x140xf32>
    %79 = arith.addf %76, %78 : vector<32x140xf32>
    %80 = math.tanh %79 : vector<32x140xf32>
    %c128_i32_44 = arith.constant 128 : i32
    %81 = arith.muli %arg1, %c128_i32_44 : i32
    %c6_i32 = arith.constant 6 : i32
    %82 = arith.subi %81, %c6_i32 : i32
    %83 = tpu.iota {dimensions = array<i32: 1>} : vector<1x140xi32>
    %84 = vector.broadcast %82 : i32 to vector<1x140xi32>
    %85 = arith.addi %84, %83 : vector<1x140xi32>
    %c0_i32_45 = arith.constant 0 : i32
    %86 = vector.broadcast %c0_i32_45 : i32 to vector<1x140xi32>
    %87 = arith.cmpi sge, %85, %86 : vector<1x140xi32>
    %c256_i32_46 = arith.constant 256 : i32
    %88 = vector.broadcast %c256_i32_46 : i32 to vector<1x140xi32>
    %89 = arith.cmpi slt, %85, %88 : vector<1x140xi32>
    %90 = arith.andi %87, %89 : vector<1x140xi1>
    %cst_47 = arith.constant 0.000000e+00 : f32
    %91 = vector.shape_cast %90 : vector<1x140xi1> to vector<1x140xi1>
    %92 = vector.broadcast %91 : vector<1x140xi1> to vector<32x140xi1>
    %93 = vector.broadcast %cst_47 : f32 to vector<32x140xf32>
    %94 = arith.select %92, %80, %93 : vector<32x140xi1>, vector<32x140xf32>
    %95 = arith.truncf %94 : vector<32x140xf32> to vector<32x140xbf16>
    %cst_48 = arith.constant 0.000000e+00 : f32
    %96 = vector.broadcast %cst_48 : f32 to vector<32x136xf32>
    %c0_49 = arith.constant 0 : index
    %c0_50 = arith.constant 0 : index
    %c0_51 = arith.constant 0 : index
    %97 = vector.load %arg5[%c0_49, %c0_50, %c0_51] : memref<5x32x32xbf16, #tpu.memory_space<vmem>>, vector<1x32x32xbf16>
    %98 = vector.shape_cast %97 : vector<1x32x32xbf16> to vector<32x32xbf16>
    %99 = vector.extract_strided_slice %95 {offsets = [0, 0], sizes = [32, 136], strides = [1, 1]} : vector<32x140xbf16> to vector<32x136xbf16>
    %cst_52 = arith.constant dense<0.000000e+00> : vector<32x136xf32>
    %100 = tpu.matmul %98, %99, %cst_52 {dimension_numbers = #tpu.dot_dimension_numbers<[1], [0], [0], [1], [0, 0, 1, 1], [], []>} : vector<32x32xbf16>, vector<32x136xbf16>, vector<32x136xf32> -> vector<32x136xf32>
    %101 = arith.addf %96, %100 : vector<32x136xf32>
    %c1_53 = arith.constant 1 : index
    %c0_54 = arith.constant 0 : index
    %c0_55 = arith.constant 0 : index
    %102 = vector.load %arg5[%c1_53, %c0_54, %c0_55] : memref<5x32x32xbf16, #tpu.memory_space<vmem>>, vector<1x32x32xbf16>
    %103 = vector.shape_cast %102 : vector<1x32x32xbf16> to vector<32x32xbf16>
    %104 = vector.extract_strided_slice %95 {offsets = [0, 1], sizes = [32, 136], strides = [1, 1]} : vector<32x140xbf16> to vector<32x136xbf16>
    %cst_56 = arith.constant dense<0.000000e+00> : vector<32x136xf32>
    %105 = tpu.matmul %103, %104, %cst_56 {dimension_numbers = #tpu.dot_dimension_numbers<[1], [0], [0], [1], [0, 0, 1, 1], [], []>} : vector<32x32xbf16>, vector<32x136xbf16>, vector<32x136xf32> -> vector<32x136xf32>
    %106 = arith.addf %101, %105 : vector<32x136xf32>
    %c2_57 = arith.constant 2 : index
    %c0_58 = arith.constant 0 : index
    %c0_59 = arith.constant 0 : index
    %107 = vector.load %arg5[%c2_57, %c0_58, %c0_59] : memref<5x32x32xbf16, #tpu.memory_space<vmem>>, vector<1x32x32xbf16>
    %108 = vector.shape_cast %107 : vector<1x32x32xbf16> to vector<32x32xbf16>
    %109 = vector.extract_strided_slice %95 {offsets = [0, 2], sizes = [32, 136], strides = [1, 1]} : vector<32x140xbf16> to vector<32x136xbf16>
    %cst_60 = arith.constant dense<0.000000e+00> : vector<32x136xf32>
    %110 = tpu.matmul %108, %109, %cst_60 {dimension_numbers = #tpu.dot_dimension_numbers<[1], [0], [0], [1], [0, 0, 1, 1], [], []>} : vector<32x32xbf16>, vector<32x136xbf16>, vector<32x136xf32> -> vector<32x136xf32>
    %111 = arith.addf %106, %110 : vector<32x136xf32>
    %c3_61 = arith.constant 3 : index
    %c0_62 = arith.constant 0 : index
    %c0_63 = arith.constant 0 : index
    %112 = vector.load %arg5[%c3_61, %c0_62, %c0_63] : memref<5x32x32xbf16, #tpu.memory_space<vmem>>, vector<1x32x32xbf16>
    %113 = vector.shape_cast %112 : vector<1x32x32xbf16> to vector<32x32xbf16>
    %114 = vector.extract_strided_slice %95 {offsets = [0, 3], sizes = [32, 136], strides = [1, 1]} : vector<32x140xbf16> to vector<32x136xbf16>
    %cst_64 = arith.constant dense<0.000000e+00> : vector<32x136xf32>
    %115 = tpu.matmul %113, %114, %cst_64 {dimension_numbers = #tpu.dot_dimension_numbers<[1], [0], [0], [1], [0, 0, 1, 1], [], []>} : vector<32x32xbf16>, vector<32x136xbf16>, vector<32x136xf32> -> vector<32x136xf32>
    %116 = arith.addf %111, %115 : vector<32x136xf32>
    %c4_65 = arith.constant 4 : index
    %c0_66 = arith.constant 0 : index
    %c0_67 = arith.constant 0 : index
    %117 = vector.load %arg5[%c4_65, %c0_66, %c0_67] : memref<5x32x32xbf16, #tpu.memory_space<vmem>>, vector<1x32x32xbf16>
    %118 = vector.shape_cast %117 : vector<1x32x32xbf16> to vector<32x32xbf16>
    %119 = vector.extract_strided_slice %95 {offsets = [0, 4], sizes = [32, 136], strides = [1, 1]} : vector<32x140xbf16> to vector<32x136xbf16>
    %cst_68 = arith.constant dense<0.000000e+00> : vector<32x136xf32>
    %120 = tpu.matmul %118, %119, %cst_68 {dimension_numbers = #tpu.dot_dimension_numbers<[1], [0], [0], [1], [0, 0, 1, 1], [], []>} : vector<32x32xbf16>, vector<32x136xbf16>, vector<32x136xf32> -> vector<32x136xf32>
    %121 = arith.addf %116, %120 : vector<32x136xf32>
    %c0_69 = arith.constant 0 : index
    %c0_70 = arith.constant 0 : index
    %122 = vector.load %arg10[%c0_69, %c0_70] : memref<32x1xf32, #tpu.memory_space<vmem>>, vector<32x1xf32>
    %123 = vector.broadcast %122 : vector<32x1xf32> to vector<32x136xf32>
    %124 = arith.addf %121, %123 : vector<32x136xf32>
    %125 = math.tanh %124 : vector<32x136xf32>
    %c128_i32_71 = arith.constant 128 : i32
    %126 = arith.muli %arg1, %c128_i32_71 : i32
    %c4_i32 = arith.constant 4 : i32
    %127 = arith.subi %126, %c4_i32 : i32
    %128 = tpu.iota {dimensions = array<i32: 1>} : vector<1x136xi32>
    %129 = vector.broadcast %127 : i32 to vector<1x136xi32>
    %130 = arith.addi %129, %128 : vector<1x136xi32>
    %c0_i32_72 = arith.constant 0 : i32
    %131 = vector.broadcast %c0_i32_72 : i32 to vector<1x136xi32>
    %132 = arith.cmpi sge, %130, %131 : vector<1x136xi32>
    %c256_i32_73 = arith.constant 256 : i32
    %133 = vector.broadcast %c256_i32_73 : i32 to vector<1x136xi32>
    %134 = arith.cmpi slt, %130, %133 : vector<1x136xi32>
    %135 = arith.andi %132, %134 : vector<1x136xi1>
    %cst_74 = arith.constant 0.000000e+00 : f32
    %136 = vector.shape_cast %135 : vector<1x136xi1> to vector<1x136xi1>
    %137 = vector.broadcast %136 : vector<1x136xi1> to vector<32x136xi1>
    %138 = vector.broadcast %cst_74 : f32 to vector<32x136xf32>
    %139 = arith.select %137, %125, %138 : vector<32x136xi1>, vector<32x136xf32>
    %140 = arith.truncf %139 : vector<32x136xf32> to vector<32x136xbf16>
    %cst_75 = arith.constant 0.000000e+00 : f32
    %141 = vector.broadcast %cst_75 : f32 to vector<32x132xf32>
    %c0_76 = arith.constant 0 : index
    %c0_77 = arith.constant 0 : index
    %c0_78 = arith.constant 0 : index
    %142 = vector.load %arg6[%c0_76, %c0_77, %c0_78] : memref<5x32x32xbf16, #tpu.memory_space<vmem>>, vector<1x32x32xbf16>
    %143 = vector.shape_cast %142 : vector<1x32x32xbf16> to vector<32x32xbf16>
    %144 = vector.extract_strided_slice %140 {offsets = [0, 0], sizes = [32, 132], strides = [1, 1]} : vector<32x136xbf16> to vector<32x132xbf16>
    %cst_79 = arith.constant dense<0.000000e+00> : vector<32x132xf32>
    %145 = tpu.matmul %143, %144, %cst_79 {dimension_numbers = #tpu.dot_dimension_numbers<[1], [0], [0], [1], [0, 0, 1, 1], [], []>} : vector<32x32xbf16>, vector<32x132xbf16>, vector<32x132xf32> -> vector<32x132xf32>
    %146 = arith.addf %141, %145 : vector<32x132xf32>
    %c1_80 = arith.constant 1 : index
    %c0_81 = arith.constant 0 : index
    %c0_82 = arith.constant 0 : index
    %147 = vector.load %arg6[%c1_80, %c0_81, %c0_82] : memref<5x32x32xbf16, #tpu.memory_space<vmem>>, vector<1x32x32xbf16>
    %148 = vector.shape_cast %147 : vector<1x32x32xbf16> to vector<32x32xbf16>
    %149 = vector.extract_strided_slice %140 {offsets = [0, 1], sizes = [32, 132], strides = [1, 1]} : vector<32x136xbf16> to vector<32x132xbf16>
    %cst_83 = arith.constant dense<0.000000e+00> : vector<32x132xf32>
    %150 = tpu.matmul %148, %149, %cst_83 {dimension_numbers = #tpu.dot_dimension_numbers<[1], [0], [0], [1], [0, 0, 1, 1], [], []>} : vector<32x32xbf16>, vector<32x132xbf16>, vector<32x132xf32> -> vector<32x132xf32>
    %151 = arith.addf %146, %150 : vector<32x132xf32>
    %c2_84 = arith.constant 2 : index
    %c0_85 = arith.constant 0 : index
    %c0_86 = arith.constant 0 : index
    %152 = vector.load %arg6[%c2_84, %c0_85, %c0_86] : memref<5x32x32xbf16, #tpu.memory_space<vmem>>, vector<1x32x32xbf16>
    %153 = vector.shape_cast %152 : vector<1x32x32xbf16> to vector<32x32xbf16>
    %154 = vector.extract_strided_slice %140 {offsets = [0, 2], sizes = [32, 132], strides = [1, 1]} : vector<32x136xbf16> to vector<32x132xbf16>
    %cst_87 = arith.constant dense<0.000000e+00> : vector<32x132xf32>
    %155 = tpu.matmul %153, %154, %cst_87 {dimension_numbers = #tpu.dot_dimension_numbers<[1], [0], [0], [1], [0, 0, 1, 1], [], []>} : vector<32x32xbf16>, vector<32x132xbf16>, vector<32x132xf32> -> vector<32x132xf32>
    %156 = arith.addf %151, %155 : vector<32x132xf32>
    %c3_88 = arith.constant 3 : index
    %c0_89 = arith.constant 0 : index
    %c0_90 = arith.constant 0 : index
    %157 = vector.load %arg6[%c3_88, %c0_89, %c0_90] : memref<5x32x32xbf16, #tpu.memory_space<vmem>>, vector<1x32x32xbf16>
    %158 = vector.shape_cast %157 : vector<1x32x32xbf16> to vector<32x32xbf16>
    %159 = vector.extract_strided_slice %140 {offsets = [0, 3], sizes = [32, 132], strides = [1, 1]} : vector<32x136xbf16> to vector<32x132xbf16>
    %cst_91 = arith.constant dense<0.000000e+00> : vector<32x132xf32>
    %160 = tpu.matmul %158, %159, %cst_91 {dimension_numbers = #tpu.dot_dimension_numbers<[1], [0], [0], [1], [0, 0, 1, 1], [], []>} : vector<32x32xbf16>, vector<32x132xbf16>, vector<32x132xf32> -> vector<32x132xf32>
    %161 = arith.addf %156, %160 : vector<32x132xf32>
    %c4_92 = arith.constant 4 : index
    %c0_93 = arith.constant 0 : index
    %c0_94 = arith.constant 0 : index
    %162 = vector.load %arg6[%c4_92, %c0_93, %c0_94] : memref<5x32x32xbf16, #tpu.memory_space<vmem>>, vector<1x32x32xbf16>
    %163 = vector.shape_cast %162 : vector<1x32x32xbf16> to vector<32x32xbf16>
    %164 = vector.extract_strided_slice %140 {offsets = [0, 4], sizes = [32, 132], strides = [1, 1]} : vector<32x136xbf16> to vector<32x132xbf16>
    %cst_95 = arith.constant dense<0.000000e+00> : vector<32x132xf32>
    %165 = tpu.matmul %163, %164, %cst_95 {dimension_numbers = #tpu.dot_dimension_numbers<[1], [0], [0], [1], [0, 0, 1, 1], [], []>} : vector<32x32xbf16>, vector<32x132xbf16>, vector<32x132xf32> -> vector<32x132xf32>
    %166 = arith.addf %161, %165 : vector<32x132xf32>
    %c0_96 = arith.constant 0 : index
    %c0_97 = arith.constant 0 : index
    %167 = vector.load %arg11[%c0_96, %c0_97] : memref<32x1xf32, #tpu.memory_space<vmem>>, vector<32x1xf32>
    %168 = vector.broadcast %167 : vector<32x1xf32> to vector<32x132xf32>
    %169 = arith.addf %166, %168 : vector<32x132xf32>
    %170 = math.tanh %169 : vector<32x132xf32>
    %c128_i32_98 = arith.constant 128 : i32
    %171 = arith.muli %arg1, %c128_i32_98 : i32
    %c2_i32 = arith.constant 2 : i32
    %172 = arith.subi %171, %c2_i32 : i32
    %173 = tpu.iota {dimensions = array<i32: 1>} : vector<1x132xi32>
    %174 = vector.broadcast %172 : i32 to vector<1x132xi32>
    %175 = arith.addi %174, %173 : vector<1x132xi32>
    %c0_i32_99 = arith.constant 0 : i32
    %176 = vector.broadcast %c0_i32_99 : i32 to vector<1x132xi32>
    %177 = arith.cmpi sge, %175, %176 : vector<1x132xi32>
    %c256_i32_100 = arith.constant 256 : i32
    %178 = vector.broadcast %c256_i32_100 : i32 to vector<1x132xi32>
    %179 = arith.cmpi slt, %175, %178 : vector<1x132xi32>
    %180 = arith.andi %177, %179 : vector<1x132xi1>
    %cst_101 = arith.constant 0.000000e+00 : f32
    %181 = vector.shape_cast %180 : vector<1x132xi1> to vector<1x132xi1>
    %182 = vector.broadcast %181 : vector<1x132xi1> to vector<32x132xi1>
    %183 = vector.broadcast %cst_101 : f32 to vector<32x132xf32>
    %184 = arith.select %182, %170, %183 : vector<32x132xi1>, vector<32x132xf32>
    %185 = arith.truncf %184 : vector<32x132xf32> to vector<32x132xbf16>
    %cst_102 = arith.constant 0.000000e+00 : f32
    %186 = vector.broadcast %cst_102 : f32 to vector<8x128xf32>
    %c0_103 = arith.constant 0 : index
    %c0_104 = arith.constant 0 : index
    %c0_105 = arith.constant 0 : index
    %187 = vector.load %arg7[%c0_103, %c0_104, %c0_105] : memref<5x8x32xbf16, #tpu.memory_space<vmem>>, vector<1x8x32xbf16>
    %188 = vector.shape_cast %187 : vector<1x8x32xbf16> to vector<8x32xbf16>
    %189 = vector.extract_strided_slice %185 {offsets = [0, 0], sizes = [32, 128], strides = [1, 1]} : vector<32x132xbf16> to vector<32x128xbf16>
    %cst_106 = arith.constant dense<0.000000e+00> : vector<8x128xf32>
    %190 = tpu.matmul %188, %189, %cst_106 {dimension_numbers = #tpu.dot_dimension_numbers<[1], [0], [0], [1], [0, 0, 1, 1], [], []>} : vector<8x32xbf16>, vector<32x128xbf16>, vector<8x128xf32> -> vector<8x128xf32>
    %191 = arith.addf %186, %190 : vector<8x128xf32>
    %c1_107 = arith.constant 1 : index
    %c0_108 = arith.constant 0 : index
    %c0_109 = arith.constant 0 : index
    %192 = vector.load %arg7[%c1_107, %c0_108, %c0_109] : memref<5x8x32xbf16, #tpu.memory_space<vmem>>, vector<1x8x32xbf16>
    %193 = vector.shape_cast %192 : vector<1x8x32xbf16> to vector<8x32xbf16>
    %194 = vector.extract_strided_slice %185 {offsets = [0, 1], sizes = [32, 128], strides = [1, 1]} : vector<32x132xbf16> to vector<32x128xbf16>
    %cst_110 = arith.constant dense<0.000000e+00> : vector<8x128xf32>
    %195 = tpu.matmul %193, %194, %cst_110 {dimension_numbers = #tpu.dot_dimension_numbers<[1], [0], [0], [1], [0, 0, 1, 1], [], []>} : vector<8x32xbf16>, vector<32x128xbf16>, vector<8x128xf32> -> vector<8x128xf32>
    %196 = arith.addf %191, %195 : vector<8x128xf32>
    %c2_111 = arith.constant 2 : index
    %c0_112 = arith.constant 0 : index
    %c0_113 = arith.constant 0 : index
    %197 = vector.load %arg7[%c2_111, %c0_112, %c0_113] : memref<5x8x32xbf16, #tpu.memory_space<vmem>>, vector<1x8x32xbf16>
    %198 = vector.shape_cast %197 : vector<1x8x32xbf16> to vector<8x32xbf16>
    %199 = vector.extract_strided_slice %185 {offsets = [0, 2], sizes = [32, 128], strides = [1, 1]} : vector<32x132xbf16> to vector<32x128xbf16>
    %cst_114 = arith.constant dense<0.000000e+00> : vector<8x128xf32>
    %200 = tpu.matmul %198, %199, %cst_114 {dimension_numbers = #tpu.dot_dimension_numbers<[1], [0], [0], [1], [0, 0, 1, 1], [], []>} : vector<8x32xbf16>, vector<32x128xbf16>, vector<8x128xf32> -> vector<8x128xf32>
    %201 = arith.addf %196, %200 : vector<8x128xf32>
    %c3_115 = arith.constant 3 : index
    %c0_116 = arith.constant 0 : index
    %c0_117 = arith.constant 0 : index
    %202 = vector.load %arg7[%c3_115, %c0_116, %c0_117] : memref<5x8x32xbf16, #tpu.memory_space<vmem>>, vector<1x8x32xbf16>
    %203 = vector.shape_cast %202 : vector<1x8x32xbf16> to vector<8x32xbf16>
    %204 = vector.extract_strided_slice %185 {offsets = [0, 3], sizes = [32, 128], strides = [1, 1]} : vector<32x132xbf16> to vector<32x128xbf16>
    %cst_118 = arith.constant dense<0.000000e+00> : vector<8x128xf32>
    %205 = tpu.matmul %203, %204, %cst_118 {dimension_numbers = #tpu.dot_dimension_numbers<[1], [0], [0], [1], [0, 0, 1, 1], [], []>} : vector<8x32xbf16>, vector<32x128xbf16>, vector<8x128xf32> -> vector<8x128xf32>
    %206 = arith.addf %201, %205 : vector<8x128xf32>
    %c4_119 = arith.constant 4 : index
    %c0_120 = arith.constant 0 : index
    %c0_121 = arith.constant 0 : index
    %207 = vector.load %arg7[%c4_119, %c0_120, %c0_121] : memref<5x8x32xbf16, #tpu.memory_space<vmem>>, vector<1x8x32xbf16>
    %208 = vector.shape_cast %207 : vector<1x8x32xbf16> to vector<8x32xbf16>
    %209 = vector.extract_strided_slice %185 {offsets = [0, 4], sizes = [32, 128], strides = [1, 1]} : vector<32x132xbf16> to vector<32x128xbf16>
    %cst_122 = arith.constant dense<0.000000e+00> : vector<8x128xf32>
    %210 = tpu.matmul %208, %209, %cst_122 {dimension_numbers = #tpu.dot_dimension_numbers<[1], [0], [0], [1], [0, 0, 1, 1], [], []>} : vector<8x32xbf16>, vector<32x128xbf16>, vector<8x128xf32> -> vector<8x128xf32>
    %211 = arith.addf %206, %210 : vector<8x128xf32>
    %c0_123 = arith.constant 0 : index
    %c0_124 = arith.constant 0 : index
    %212 = vector.load %arg12[%c0_123, %c0_124] : memref<8x1xf32, #tpu.memory_space<vmem>>, vector<8x1xf32>
    %213 = vector.broadcast %212 : vector<8x1xf32> to vector<8x128xf32>
    %214 = arith.addf %211, %213 : vector<8x128xf32>
    %c0_125 = arith.constant 0 : index
    %c0_126 = arith.constant 0 : index
    %c0_127 = arith.constant 0 : index
    %215 = vector.load %arg13[%c0_125, %c0_126, %c0_127] : memref<1x8x128xf32, #tpu.memory_space<vmem>>, vector<1x8x128xf32>
    %216 = vector.shape_cast %215 : vector<1x8x128xf32> to vector<8x128xf32>
    %217 = vector.shape_cast %214 : vector<8x128xf32> to vector<1x8x128xf32>
    tpu.vector_store %arg13[%c0_125, %c0_126, %c0_127], %217 {strides = array<i32>} : memref<1x8x128xf32, #tpu.memory_space<vmem>>, vector<1x8x128xf32>,
    return
  }
  func.func @transform_0(%arg0: i32, %arg1: i32) -> (i32, i32, i32) {
    %c0_i32 = arith.constant 0 : i32
    %c0_i32_0 = arith.constant 0 : i32
    %c0_i32_1 = arith.constant 0 : i32
    return %arg0, %c0_i32, %c0_i32_0 : i32, i32, i32
  }
  func.func @transform_1(%arg0: i32, %arg1: i32) -> (i32, i32, i32) {
    %c0_i32 = arith.constant 0 : i32
    %c0_i32_0 = arith.constant 0 : i32
    %c0_i32_1 = arith.constant 0 : i32
    %c0_i32_2 = arith.constant 0 : i32
    return %c0_i32, %c0_i32_0, %c0_i32_1 : i32, i32, i32
  }
  func.func @transform_2(%arg0: i32, %arg1: i32) -> (i32, i32, i32) {
    %c0_i32 = arith.constant 0 : i32
    %c0_i32_0 = arith.constant 0 : i32
    %c0_i32_1 = arith.constant 0 : i32
    %c0_i32_2 = arith.constant 0 : i32
    return %c0_i32, %c0_i32_0, %c0_i32_1 : i32, i32, i32
  }
  func.func @transform_3(%arg0: i32, %arg1: i32) -> (i32, i32, i32) {
    %c0_i32 = arith.constant 0 : i32
    %c0_i32_0 = arith.constant 0 : i32
    %c0_i32_1 = arith.constant 0 : i32
    %c0_i32_2 = arith.constant 0 : i32
    return %c0_i32, %c0_i32_0, %c0_i32_1 : i32, i32, i32
  }
  func.func @transform_4(%arg0: i32, %arg1: i32) -> (i32, i32, i32) {
    %c0_i32 = arith.constant 0 : i32
    %c0_i32_0 = arith.constant 0 : i32
    %c0_i32_1 = arith.constant 0 : i32
    %c0_i32_2 = arith.constant 0 : i32
    return %c0_i32, %c0_i32_0, %c0_i32_1 : i32, i32, i32
  }
  func.func @transform_5(%arg0: i32, %arg1: i32) -> (i32, i32, i32) {
    %c0_i32 = arith.constant 0 : i32
    %c0_i32_0 = arith.constant 0 : i32
    %c0_i32_1 = arith.constant 0 : i32
    %c0_i32_2 = arith.constant 0 : i32
    return %c0_i32, %c0_i32_0, %c0_i32_1 : i32, i32, i32
  }
  func.func @transform_6(%arg0: i32, %arg1: i32) -> (i32, i32) {
    %c0_i32 = arith.constant 0 : i32
    %c0_i32_0 = arith.constant 0 : i32
    %c0_i32_1 = arith.constant 0 : i32
    return %c0_i32, %c0_i32_0 : i32, i32
  }
  func.func @transform_7(%arg0: i32, %arg1: i32) -> (i32, i32) {
    %c0_i32 = arith.constant 0 : i32
    %c0_i32_0 = arith.constant 0 : i32
    %c0_i32_1 = arith.constant 0 : i32
    return %c0_i32, %c0_i32_0 : i32, i32
  }
  func.func @transform_8(%arg0: i32, %arg1: i32) -> (i32, i32) {
    %c0_i32 = arith.constant 0 : i32
    %c0_i32_0 = arith.constant 0 : i32
    %c0_i32_1 = arith.constant 0 : i32
    return %c0_i32, %c0_i32_0 : i32, i32
  }
  func.func @transform_9(%arg0: i32, %arg1: i32) -> (i32, i32) {
    %c0_i32 = arith.constant 0 : i32
    %c0_i32_0 = arith.constant 0 : i32
    %c0_i32_1 = arith.constant 0 : i32
    return %c0_i32, %c0_i32_0 : i32, i32
  }
  func.func @transform_10(%arg0: i32, %arg1: i32) -> (i32, i32) {
    %c0_i32 = arith.constant 0 : i32
    %c0_i32_0 = arith.constant 0 : i32
    %c0_i32_1 = arith.constant 0 : i32
    return %c0_i32, %c0_i32_0 : i32, i32
  }
  func.func @transform_11(%arg0: i32, %arg1: i32) -> (i32, i32, i32) {
    %c0_i32 = arith.constant 0 : i32
    %c0_i32_0 = arith.constant 0 : i32
    return %arg0, %c0_i32, %arg1 : i32, i32, i32
  }
}

</mosaic_0001>

<bundles_post_ra>
// kernel: tpu_custom_call.1
= control target key start
LH: loop header
LB: loop body
LE: loop exit
PB: predicated region body
PF: predicated region fallthrough
CT: control target
= control target key end

     0   :  { %s4139_s0 = inlined_call_operand.hbm [shape: f32[2,8,276], index: 0, kind: input, shape index: {}]   ;;  %s4140_s1 = inlined_call_operand.vmem [shape: bf16[5,32,8], index: 1, kind: input, shape index: {}]   ;;  %s4141_s2 = inlined_call_operand.vmem [shape: bf16[5,32,32], index: 2, kind: input, shape index: {}]   ;;  %s4142_s3 = inlined_call_operand.vmem [shape: bf16[5,32,32], index: 3, kind: input, shape index: {}]   ;;  %s4143_s4 = inlined_call_operand.vmem [shape: bf16[5,32,32], index: 4, kind: input, shape index: {}]   ;;  %s4144_s5 = inlined_call_operand.hbm [shape: bf16[5,8,32], index: 5, kind: input, shape index: {}]   ;;  %s4145_s6 = inlined_call_operand.vmem [shape: f32[32,1], index: 6, kind: input, shape index: {}]   ;;  %s4146_s7 = inlined_call_operand.vmem [shape: f32[32,1], index: 7, kind: input, shape index: {}]   ;;  %s4147_s8 = inlined_call_operand.vmem [shape: f32[32,1], index: 8, kind: input, shape index: {}]   ;;  %s4148_s9 = inlined_call_operand.vmem [shape: f32[32,1], index: 9, kind: input, shape index: {}]   ;;  %s4149_s10 = inlined_call_operand.vmem [shape: f32[8,1], index: 10, kind: input, shape index: {}]   ;;  %s4150_s11 = inlined_call_operand.hbm [shape: f32[2,8,256], index: 11, kind: output, shape index: {}]  }
   0x1   :  { %4166 = sst [smem:[#allocation20_spill]] %s4142_s3 }
   0x2   :  { %4167 = sst [smem:[#allocation21_spill]] %s4143_s4 }
   0x3   :  { %4168 = sst [smem:[#allocation22_spill]] %s4144_s5 }
   0x4   :  { %4169 = sst [smem:[#allocation23_spill]] %s4147_s8 }
   0x5   :  { %4170 = sst [smem:[#allocation24_spill]] %s4148_s9 }
   0x6   :  { %4171 = sst [smem:[#allocation25_spill]] %s4149_s10 }
   0x7   :  { %4172 = sst [smem:[#allocation26_spill]] %s4150_s11 }
   0x8   :  { %16 = vsyncpa [#allocation3], 0 }
   0x9   :  { %18 = vsyncpa [#allocation3 + $0x1], 0 }
   0xa   :  { %19 = vsyncpa [#allocation6], 0 }
   0xb   :  { %20 = vsyncpa [#allocation4], 0 }
   0xc   :  { %22 = vsyncpa [#allocation4 + $0x1], 0  ;;  %s3368_s17 = smov 0   ;;  %s3370_s18 = smov 0  }
   0xd   :  { %s3372_s19 = smov 0   ;;  %s3374_s20 = smov 0  }
   0xe   :  { %s3376_s21 = smov 0   ;;  %s3378_s22 = smov 0  }
   0xf   :  { %s3380_s23 = smov 0   ;;  %s3382_s24 = smov 0  }
  0x10   :  { %s3384_s25 = smov 0   ;;  %s3386_s26 = smov 0  }
  0x11   :  { %s3388_s27 = smov 0  }
  0x12 LB: > { %4173 = sst [smem:[#allocation11_spill]] %s3258_s17  ;;  %s2553_s28 = sadd.s32 4294967295, %s3298_s27   ;;  %s3298_s27 = sphi %s3388_s27, %s28_s27   ;;  %s3294_s26 = sphi %s3386_s26, %s4228_s26   ;;  %s3290_s25 = sphi %s3384_s25, %s4220_s25   ;;  %s3286_s24 = sphi %s3382_s24, %s4227_s24   ;;  %s3282_s23 = sphi %s3380_s23, %s4219_s23   ;;  %s3278_s22 = sphi %s3378_s22, %s4226_s22   ;;  %s3274_s21 = sphi %s3376_s21, %s4225_s21   ;;  %s3270_s20 = sphi %s3374_s20, %s4224_s20   ;;  %s3266_s19 = sphi %s3372_s19, %s4223_s19   ;;  %s3262_s18 = sphi %s3370_s18, %s4222_s18   ;;  %s3258_s17 = sphi %s3368_s17, %s4217_s17  }
  0x13   : > { %4174 = sst [smem:[#allocation12_spill]] %s3262_s18  ;;  %s2554_s29 = sadd.s32 4294967294, %s3298_s27  }
  0x14   : > { %4175 = sst [smem:[#allocation13_spill]] %s3286_s24  ;;  %p3425_p0 = scmp.eq.s32.totalorder %s2553_s28, 0 }
  0x15   : > { %4176 = sst [smem:[#allocation14_spill]] %s3290_s25  ;;  %p295_p1 = scmp.ne.s32.totalorder %s3266_s19, %s3262_s18 }
  0x16   : > { %4177 = sst [smem:[#allocation15_spill]] %s3298_s27  ;;  %p296_p2 = scmp.eq.s32.totalorder %s2553_s28, 3 }
  0x17   : > { %p301_p3 = scmp.ne.s32.totalorder %s3262_s18, %s3258_s17  ;;  %p302_p4 = scmp.eq.s32.totalorder %s2554_s29, 3 }
  0x18   : > { %p2555_p5 = scmp.ge.s32.totalorder %s3298_s27, 1  ;;  %p3434_p6 = por %p296_p2, %p295_p1 }
  0x19   : > { %p309_p7 = scmp.lt.s32.totalorder %s3298_s27, 5  ;;  %p3439_p8 = por %p302_p4, %p301_p3 }
  0x1a   : > { %s4179_s12 = scalar_select %p3434_p6, 1, 0 }
  0x1b   : > { %s4181_s13 = scalar_select %p3439_p8, 1, 0 }
  0x1c   : > { %4180 = sst [smem:[#allocation16_spill]] %s4179_s12  ;;  %p3443_p9 = pnand %p2555_p5, %p309_p7 }
  0x1d   : > { %4182 = sst [smem:[#allocation17_spill]] %s4181_s13  ;;  %s3300_s29 = smov [#allocation5]  }
  0x1e   : > { %s4184_s5 = sld [smem:[#allocation22_spill]]  ;;  %p2933_p10 = pneg %p3443_p9 }
  0x1f   : > { %s334_s13 = sshll.u32 %s3300_s29, 4  ;;  %s3301_s17 = smov 64   ;;  %s335_s13 = int_to_ptr.vmem [resolvable:$true] %s334_s13 }
  0x20   : > { %p2934_p11 = pnand %p2933_p10, %p3425_p0  ;;  %s3302_s12 = smov 4  }
  0x21   : > { %s37_s15 = sadd.s32 1, %s3290_s25  ;;  %s40_s16 = sadd.s32 1, %s3294_s26 }
  0x22   : > { %p38_p12 = scmp.ge.s32.totalorder %s37_s15, 2  ;;  %p54_p13 = scmp.ne.s32.totalorder %s3278_s22, %s3274_s21 }
  0x23   : > { %p55_p1 = scmp.eq.s32.totalorder %s3298_s27, 0  ;;  %p60_p3 = scmp.ne.s32.totalorder %s3274_s21, %s3270_s20 }
  0x24   : > { %s332_s28 = sshll.u32 %s4184_s5, 4  ;;  %s47_s5 = sadd.s32 1, %s3278_s22  ;;  %s333_s28 = int_to_ptr.hbm [resolvable:$true] %s332_s28 }
  0x25   : > { %2936 = dma.hbm_to_vmem [thread:$0]  (!%p2934_p11), %s333_s28, 320, %s335_s13, [#allocation6], %s3301_s17, %s3301_s17, %s3302_s12  }
  0x26   : > { %s4230_s15 = smov (%p38_p12, %s37_s15), 0  ;;  %s4232_s16 = smov (!%p38_p12, %s40_s16), %s3294_s26 }
  0x27   : > { %4185 = sst [smem:[#allocation18_spill]] %s4230_s15  ;;  %p3463_p2 = por %p55_p1, %p54_p13 }
  0x28   : > { %p42_p4 = scmp.ge.s32.totalorder %s4232_s16, 2  ;;  %s281_s17 = ssub.s32 %s3290_s25, %s4230_s15 }
  0x29   : > { %p3473_p5 = por %p3425_p0, %p60_p3  ;;  %s285_s13 = sadd.s32 1, %s3266_s19 }
  0x2a   : > { %s4234_s16 = smov (%p42_p4, %s4232_s16), 0  ;;  %p2946_p7 = scmp.lt.s32.totalorder %s3298_s27, 4 }
  0x2b   : > { %4188 = sst [smem:[#allocation19_spill]] %s4234_s16  ;;  %s363_s28 = sand.u32 1, %s3278_s22  }
  0x2c   : > { %s44_s11 = ssub.s32 %s3294_s26, %s4234_s16  ;;  %s2922_s24 = smul.u32 24, %s363_s28 }
  0x2d   : > { %p45_p10 = scmp.eq.s32.totalorder %s44_s11, 0  ;;  %s282_s18 = sor.u32 %s281_s17, %s44_s11 }
  0x2e   : > { %p283_p11 = scmp.eq.s32.totalorder %s282_s18, 0  ;;  %s2923_s25 = smul.u32 24, %s3294_s26 }
  0x2f   : > { %s3485_s20 = scalar_select %p45_p10, %s3278_s22, %s47_s5  }
  0x30   : > { %s3488_s15 = scalar_select %p283_p11, %s3266_s19, %s285_s13  }
  0x31   : > { %s367_s10 = scalar_lea.vmem [#allocation2], %s2922_s24  ;;  %p2938_p12 = pnand %p2946_p7, %p3463_p2 }
  0x32   : > { %s376_s4 = sshll.u32 %s367_s10, 4  ;;  %s372_s8 = scalar_lea.hbm %s4139_s0, %s2923_s25  ;;  %s377_s4 = int_to_ptr.vmem [resolvable:$true] %s376_s4 }
  0x33   : > { %s374_s27 = sshll.u32 %s372_s8, 4  ;;  %s364_s16 = scalar_lea.sflag [#allocation3], %s363_s28  ;;  %s375_s27 = int_to_ptr.hbm [resolvable:$true] %s374_s27 }
  0x34   : > { %2940 = dma.hbm_to_vmem [thread:$0]  (!%p2938_p12), %s375_s27, 384, %s377_s4, %s364_s16  }
  0x35   : > { %385 = sbr.rel (%p3443_p9) target bundleno = 1796 (0x704), region = 64  ;;  %s387_s5 = sand.u32 (!%p3443_p9), 1, %s3274_s21  }
  0x36   : > { %s2924_s11 = smul.u32 (!%p3443_p9), 24, %s387_s5  ;;  %s388_s18 = scalar_lea.sflag (!%p3443_p9), [#allocation3], %s387_s5 }
  0x38   : > { %s391_s10 = scalar_lea.vmem (!%p3443_p9), [#allocation2], %s2924_s11 }
  0x3a   : > { %3245 = dma.done.wait (%p3473_p5), %s388_s18, 384  }
  0x3b   : > { %3247 = vsyncadd (%p3473_p5), %s388_s18, 4294966912 }
  0x3c   : > { %3249 = dma.done.wait (%p3425_p0), [#allocation6], 320  }
  0x3d   : > { %3251 = vsyncadd (%p3425_p0), [#allocation6], 4294966976  ;;  %s3508_s3 = sshll.u32 %s3282_s23, 7  ;;  %s3303_s24 = smov 127   ;;  %vm482_vm0 = vcmask 1043456   ;;  %v2882_v9 = vld [vmem:[%s4140_s1] sm:$0xff] }
  0x3e   : > { %s438_s4 = sshra.s32 %s3508_s3, 7  ;;  %s3304_s25 = smov 126   ;;  %vm475_vm1 = vcmask 64512   ;;  %v2883_v10 = vld [vmem:[%s4140_s1 + $0x8] sm:$0xff]  ;;  %vm685_vm2 = vcmask 1022976   ;;  %v2888_v18 = vld [vmem:[%s4140_s1 + $0x30] sm:$0xff] }
  0x3f   : > { %s2563_s8 = sshll.u32 %s438_s4, 3  ;;  %s3305_s27 = smov 125   ;;  %vm473_vm3 = vcmask 1039360   ;;  %vm606_vm4 = vcmask 1031168   ;;  %v2884_v23 = vld [vmem:[%s4140_s1 + $0x10] sm:$0xff]  ;;  %v2889_v28 = vld [vmem:[%s4140_s1 + $0x38] sm:$0xff] }
  0x40   : > { %s441_s9 = scalar_lea.vmem %s391_s10, %s2563_s8 [#allocation2]  ;;  %s3306_s30 = smov 124   ;;  %v2885_v29 = vld [vmem:[%s4140_s1 + $0x18] sm:$0xff]  ;;  %vm764_vm5 = vcmask 1014784   ;;  %v2886_v35 = vld [vmem:[%s4140_s1 + $0x20] sm:$0xff]  ;;  %v3307_v37 = vmov 0   ;;  %v2887_v38 = vld [vmem:[%s4140_s1 + $0x28] sm:$0xff] }
  0x41   : > { %v442_v0 = vld [vmem:[%s441_s9] sm:$0xff]  ;;  %v443_v1 = vld [vmem:[%s441_s9 + $0x8] sm:$0xff]  ;;  %3047 = vset.pattern.permute.xlu1 %v3307_v37  ;;  %3046 = vset.pattern.permute.xlu0 %v3307_v37  ;;  %v826_v39 = vld [vmem:[%s4145_s6 + $0x10] sm:$0xff]  ;;  %s2640_s14 = sadd.s32 4294967288, %s3508_s3  ;;  %vm942_vm12 = vcmask 261120   ;;  %s2717_s16 = sadd.s32 4294967290, %s3508_s3 }
  0x42   : > { %v444_v2 = vpack.c.bf16 %v443_v1, %v442_v0  ;;  %v824_v36 = vld [vmem:[%s4145_s6] sm:$0xff]  ;;  %3045 = vset.pattern.permute.xlu2 %v3307_v37  ;;  %v827_v40 = vld [vmem:[%s4145_s6 + $0x18] sm:$0xff]  ;;  %v825_v41 = vld [vmem:[%s4145_s6 + $0x8] sm:$0xff]  ;;  %s4197_s12 = sld [smem:[#allocation23_spill]]  ;;  %s2794_s5 = sadd.s32 4294967292, %s3508_s3 }
  0x43   : > { %v2890_v42 = vld [vmem:[%s4140_s1 + $0x40] sm:$0xff]  ;;  %v2891_v43 = vld [vmem:[%s4140_s1 + $0x48] sm:$0xff]  ;;  %s4198_s9 = sld [smem:[#allocation20_spill]]  ;;  %s2871_s13 = sadd.s32 4294967294, %s3508_s3 }
  0x44   : > { %v465_v3 = vunpack.c.l.b16 %v444_v2  ;;  %v466_v5 = vunpack.c.h.b16 %v444_v2  ;;  %s4203_s10 = sld [smem:[#allocation24_spill]] }
  0x45   : > { %s4209_s28 = sld [smem:[#allocation25_spill]] }
  0x46   : > { %v467_v4 = vpack.c.b16 %v465_v3, %v465_v3  ;;  %v468_v6 = vpack.c.b16 %v466_v5, %v466_v5  ;;  %v865_v3 = vlaneseq  ;;  %s4212_s29 = sld [smem:[#allocation26_spill]] }
  0x48   : > { %469 = vrot.lane.b32.xlu0 %v467_v4, %s3303_s24  ;;  %602 = vrot.lane.b32.xlu1 %v467_v4, %s3304_s25  ;;  %v547_v7 = vsel %vm482_vm0, %v468_v6, 0  ;;  %v544_v8 = vsel %vm482_vm0, %v467_v4, 0 }
  0x49   : > { %681 = vrot.lane.b32.xlu2 %v467_v4, %s3305_s27  ;;  %575 = vmatpush.bf16.msra.mxu3 %v547_v7 }
  0x4a   : > { %556 = vmatpush.bf16.msra.mxu2 %v544_v8 }
  0x4c   : > { %2590 = vmatmul.msk.bf16.vlgmr.msra.gmra.mxu3 %vm475_vm1, %v2882_v9 }
  0x4d   : > { %2588 = vmatmul.msk.bf16.vlgmr.msra.gmra.mxu2 %vm475_vm1, %v2882_v9  ;;  %v3607_v9 = vand.u32 127, %v865_v3 }
  0x50   : > { %471 = vrot.lane.b32.xlu0 %v468_v6, %s3303_s24  ;;  %604 = vrot.lane.b32.xlu1 %v468_v6, %s3304_s25 }
  0x51   : > { %683 = vrot.lane.b32.xlu2 %v468_v6, %s3305_s27 }
  0x58   : > { %762 = vrot.lane.b32.xlu1 %v468_v6, %s3306_s30  ;;  %760 = vrot.lane.b32.xlu0 %v467_v4, %s3306_s30 }
  0x59   : > { %840 = vperm.xlu2 %3045, %v826_v39  }
  0x5c   : > { %2591 = vmatmul.msk.bf16.gmra.mxu3 %vm475_vm1, %v2883_v10 }
  0x5d   : > { %2589 = vmatmul.msk.bf16.gmra.mxu2 %vm475_vm1, %v2883_v10 }
  0x60   : > { %830 = vperm.xlu1 %3047, %v824_v36   ;;  %845 = vperm.xlu0 %3046, %v827_v40  }
  0x61   : > { %835 = vperm.xlu2 %3045, %v825_v41  }
  0xa3   : > { %v682_v11 = vpop.permute.xlu2 %681 }
  0xab   : > { %v684_v12 = vpop.permute.xlu2 %683 }
  0xac   : > { %v697_v13 = vsel %vm482_vm0, %v684_v12, 0  ;;  %v686_v14 = vsel %vm685_vm2, %v682_v11, %v684_v12 }
  0xad   : > { %725 = vmatpush.bf16.msrb.mxu3 %v697_v13  ;;  %v694_v17 = vsel %vm482_vm0, %v686_v14, 0  ;;  %v3613_v13 = vadd.s32 128, %v3607_v9 }
  0xae   : > { %706 = vmatpush.bf16.msrb.mxu2 %v694_v17 }
  0xb0   : > { %2622 = vmatmul.msk.bf16.vlgmr.msrb.gmra.mxu3 %vm475_vm1, %v2888_v18 }
  0xb1   : > { %2620 = vmatmul.msk.bf16.vlgmr.msrb.gmra.mxu2 %vm475_vm1, %v2888_v18 }
  0xb3   : > { %v3610_v12 = vpop.permute.xlu2 %840 }
  0xba   : > { %v470_v15 = vpop.permute.xlu0 %469  ;;  %v603_v16 = vpop.permute.xlu1 %602 }
  0xc0   : > { %2623 = vmatmul.msk.bf16.gmra.mxu3 %vm475_vm1, %v2889_v28 }
  0xc1   : > { %2621 = vmatmul.msk.bf16.gmra.mxu2 %vm475_vm1, %v2889_v28 }
  0xc2   : > { %v472_v19 = vpop.permute.xlu0 %471  ;;  %v605_v20 = vpop.permute.xlu1 %604 }
  0xc3   : > { %v487_v21 = vsel %vm482_vm0, %v472_v19, 0  ;;  %v474_v22 = vsel %vm473_vm3, %v470_v15, %v472_v19  ;;  %v607_v24 = vsel %vm606_vm4, %v603_v16, %v605_v20  ;;  %v618_v25 = vsel %vm482_vm0, %v605_v20, 0 }
  0xc4   : > { %515 = vmatpush.bf16.msra.mxu1 %v487_v21  ;;  %v484_v26 = vsel %vm482_vm0, %v474_v22, 0  ;;  %v615_v27 = vsel %vm482_vm0, %v607_v24, 0  ;;  %v868_v16 = vstv %s2640_s14 }
  0xc5   : > { %496 = vmatpush.bf16.msra.mxu0 %v484_v26  ;;  %v870_v26 = vadd.s32 %v868_v16, %v3613_v13  ;;  %v869_v28 = vadd.s32 %v868_v16, %v3607_v9 }
  0xc7   : > { %2578 = vmatmul.msk.bf16.vlgmr.msra.gmra.mxu1 %vm475_vm1, %v2884_v23  ;;  %vm872_vm6 = vcmp.ge.s32.totalorder %v870_v26, 0  ;;  %vm874_vm7 = vcmp.lt.s32.totalorder %v870_v26, 256  ;;  %vm871_vm8 = vcmp.ge.s32.totalorder %v869_v28, 0  ;;  %vm873_vm9 = vcmp.lt.s32.totalorder %v869_v28, 256 }
  0xc8   : > { %646 = vmatpush.bf16.msrb.mxu1 %v618_v25  ;;  %2576 = vmatmul.msk.bf16.vlgmr.msra.gmra.mxu0 %vm475_vm1, %v2884_v23  ;;  %vm3617_vm10 = vmand %vm872_vm6, %vm874_vm7 }
  0xc9   : > { %627 = vmatpush.bf16.msrb.mxu0 %v615_v27  ;;  %vm3621_vm11 = vmand %vm871_vm8, %vm873_vm9 }
  0xca   : > { %v763_v30 = vpop.permute.xlu1 %762  ;;  %v761_v31 = vpop.permute.xlu0 %760 }
  0xcb   : > { %v776_v32 = vsel %vm482_vm0, %v763_v30, 0  ;;  %v765_v33 = vsel %vm764_vm5, %v761_v31, %v763_v30 }
  0xcc   : > { %v773_v34 = vsel %vm482_vm0, %v765_v33, 0  ;;  %804 = vmatpush.bf16.msra.mxu1 %v776_v32 }
  0xcd   : > { %785 = vmatpush.bf16.msra.mxu0 %v773_v34 }
  0xcf   : > { %v577_v48 = vpop.f32.mrf.mxu3 }
  0xd0   : > { %v558_v50 = vpop.f32.mrf.mxu2 }
  0xd2   : > { %v831_v19 = vpop.permute.xlu1 %830 }
  0xd7   : > { %2579 = vmatmul.msk.bf16.gmra.mxu1 %vm475_vm1, %v2885_v29  ;;  %v579_v53 = vpop.f32.mrf.mxu3 }
  0xd8   : > { %2577 = vmatmul.msk.bf16.gmra.mxu0 %vm475_vm1, %v2885_v29  ;;  %v560_v55 = vpop.f32.mrf.mxu2 }
  0xdf   : > { %v582_v58 = vpop.f32.mrf.mxu3 }
  0xe0   : > { %v563_v59 = vpop.f32.mrf.mxu2 }
  0xe7   : > { %2606 = vmatmul.msk.bf16.vlgmr.msrb.gmra.mxu1 %vm475_vm1, %v2886_v35  ;;  %v3599_v62 = vpop.f32.mrf.mxu3 }
  0xe8   : > { %2604 = vmatmul.msk.bf16.vlgmr.msrb.gmra.mxu0 %vm475_vm1, %v2886_v35  ;;  %v3601_v63 = vpop.f32.mrf.mxu2  ;;  %v836_v35 = vpop.permute.xlu2 %835 }
  0xf7   : > { %2607 = vmatmul.msk.bf16.gmra.mxu1 %vm475_vm1, %v2887_v38 }
  0xf8   : > { %2605 = vmatmul.msk.bf16.gmra.mxu0 %vm475_vm1, %v2887_v38 }
 0x107   : > { %2638 = vmatmul.msk.bf16.vlgmr.msra.gmra.mxu1 %vm475_vm1, %v2890_v42 }
 0x108   : > { %2636 = vmatmul.msk.bf16.vlgmr.msra.gmra.mxu0 %vm475_vm1, %v2890_v42  ;;  %v1291_v42 = vld [vmem:[%s4146_s7 + $0x18] sm:$0xff] }
 0x117   : > { %2639 = vmatmul.msk.bf16.gmra.mxu1 %vm475_vm1, %v2891_v43 }
 0x118   : > { %2637 = vmatmul.msk.bf16.gmra.mxu0 %vm475_vm1, %v2891_v43 }
 0x133   : > { %v727_v2 = vpop.f32.mrf.mxu3 }
 0x134   : > { %v708_v4 = vpop.f32.mrf.mxu2 }
 0x13b   : > { %v729_v15 = vpop.f32.mrf.mxu3 }
 0x13c   : > { %v710_v21 = vpop.f32.mrf.mxu2 }
 0x143   : > { %v732_v41 = vpop.f32.mrf.mxu3 }
 0x144   : > { %v517_v44 = vpop.f32.mrf.mxu1 }
 0x145   : > { %v498_v45 = vpop.f32.mrf.mxu0  ;;  %v578_v6 = vadd.f32 %v577_v48, %v517_v44 }
 0x146   : > { %v559_v8 = vadd.f32 %v558_v50, %v498_v45 }
 0x14c   : > { %v519_v46 = vpop.f32.mrf.mxu1 }
 0x14d   : > { %v500_v47 = vpop.f32.mrf.mxu0  ;;  %v580_v20 = vadd.f32 %v579_v53, %v519_v46  ;;  %v713_v46 = vpop.f32.mrf.mxu2 }
 0x14e   : > { %v561_v24 = vadd.f32 %v560_v55, %v500_v47 }
 0x154   : > { %v522_v49 = vpop.f32.mrf.mxu1 }
 0x155   : > { %v503_v51 = vpop.f32.mrf.mxu0  ;;  %v583_v36 = vadd.f32 %v582_v58, %v522_v49 }
 0x156   : > { %v564_v40 = vadd.f32 %v563_v59, %v503_v51 }
 0x15c   : > { %v3595_v52 = vpop.f32.mrf.mxu1 }
 0x15d   : > { %v3597_v54 = vpop.f32.mrf.mxu0  ;;  %v585_v59 = vadd.f32 %v3599_v62, %v3595_v52  ;;  %v715_v62 = vpop.f32.mrf.mxu2 }
 0x164   : > { %v648_v56 = vpop.f32.mrf.mxu1 }
 0x165   : > { %v629_v57 = vpop.f32.mrf.mxu0  ;;  %v659_v10 = vadd.f32 %v648_v56, %v578_v6 }
 0x166   : > { %v658_v11 = vadd.f32 %v629_v57, %v559_v8 }
 0x167   : > { %v738_v14 = vadd.f32 %v727_v2, %v659_v10  ;;  %v734_v10 = vpop.f32.mrf.mxu3 }
 0x168   : > { %v737_v17 = vadd.f32 %v708_v4, %v658_v11 }
 0x16c   : > { %v650_v60 = vpop.f32.mrf.mxu1 }
 0x16d   : > { %v631_v61 = vpop.f32.mrf.mxu0  ;;  %v661_v27 = vadd.f32 %v650_v60, %v580_v20 }
 0x16e   : > { %v660_v30 = vadd.f32 %v631_v61, %v561_v24 }
 0x16f   : > { %v740_v32 = vadd.f32 %v729_v15, %v661_v27 }
 0x170   : > { %v739_v33 = vadd.f32 %v710_v21, %v660_v30 }
 0x174   : > { %v653_v0 = vpop.f32.mrf.mxu1 }
 0x175   : > { %v634_v1 = vpop.f32.mrf.mxu0  ;;  %v663_v45 = vadd.f32 %v653_v0, %v583_v36  ;;  %v566_v0 = vadd.f32 %v3601_v63, %v3597_v54 }
 0x176   : > { %v662_v50 = vadd.f32 %v634_v1, %v564_v40 }
 0x177   : > { %v742_v56 = vadd.f32 %v732_v41, %v663_v45  ;;  %v1288_v45 = vld [vmem:[%s4146_s7] sm:$0xff] }
 0x178   : > { %v741_v57 = vadd.f32 %v713_v46, %v662_v50 }
 0x17c   : > { %v3603_v5 = vpop.f32.mrf.mxu1 }
 0x17d   : > { %v3605_v7 = vpop.f32.mrf.mxu0  ;;  %v665_v3 = vadd.f32 %v3603_v5, %v585_v59 }
 0x17e   : > { %v664_v8 = vadd.f32 %v3605_v7, %v566_v0 }
 0x17f   : > { %v744_v63 = vadd.f32 %v734_v10, %v665_v3 }
 0x180   : > { %v743_v5 = vadd.f32 %v715_v62, %v664_v8  ;;  %v2895_v8 = vld [vmem:[%s4141_s2 + $0x18] sm:$0xff] }
 0x184   : > { %v806_v18 = vpop.f32.mrf.mxu1 }
 0x185   : > { %v817_v22 = vadd.f32 %v806_v18, %v738_v14  ;;  %v787_v23 = vpop.f32.mrf.mxu0  ;;  %v846_v18 = vpop.permute.xlu0 %845 }
 0x186   : > { %v816_v25 = vadd.f32 %v787_v23, %v737_v17 }
 0x187   : > { %v849_v29 = vadd.f32 %v831_v19, %v817_v22 }
 0x188   : > { %v848_v31 = vadd.f32 %v831_v19, %v816_v25 }
 0x189   : > { %3048 = vtanh.f32 %v849_v29 }
 0x18a   : > { %3050 = vtanh.f32 %v848_v31 }
 0x18c   : > { %v808_v34 = vpop.f32.mrf.mxu1 }
 0x18d   : > { %v819_v38 = vadd.f32 %v808_v34, %v740_v32  ;;  %v789_v39 = vpop.f32.mrf.mxu0 }
 0x18e   : > { %v818_v43 = vadd.f32 %v789_v39, %v739_v33 }
 0x18f   : > { %v3049_v44 = vpop.eup %3048  ;;  %v851_v47 = vadd.f32 %v836_v35, %v819_v38 }
 0x190   : > { %v3051_v48 = vpop.eup %3050  ;;  %v882_v49 = vsel %vm3617_vm10, %v3049_v44, 0.0  ;;  %v850_v53 = vadd.f32 %v836_v35, %v818_v43  ;;  %v1290_v43 = vld [vmem:[%s4146_s7 + $0x10] sm:$0xff]  ;;  %v1289_v44 = vld [vmem:[%s4146_s7 + $0x8] sm:$0xff] }
 0x191   : > { %v881_v55 = vsel %vm3621_vm11, %v3051_v48, 0.0  ;;  %3052 = vtanh.f32 %v851_v47  ;;  %v2892_v47 = vld [vmem:[%s4141_s2] sm:$0xff] }
 0x192   : > { %v889_v51 = vpack.c.bf16 %v882_v49, %v881_v55  ;;  %3054 = vtanh.f32 %v850_v53 }
 0x194   : > { %v811_v58 = vpop.f32.mrf.mxu1  ;;  %v916_v15 = vunpack.c.l.b16 %v889_v51  ;;  %v917_v41 = vunpack.c.h.b16 %v889_v51  ;;  %v2893_v51 = vld [vmem:[%s4141_s2 + $0x8] sm:$0xff] }
 0x195   : > { %v821_v60 = vadd.f32 %v811_v58, %v742_v56  ;;  %v792_v61 = vpop.f32.mrf.mxu0  ;;  %v2894_v58 = vld [vmem:[%s4141_s2 + $0x10] sm:$0xff] }
 0x196   : > { %v820_v1 = vadd.f32 %v792_v61, %v741_v57 }
 0x197   : > { %v3053_v2 = vpop.eup %3052  ;;  %v853_v4 = vadd.f32 %v3610_v12, %v821_v60 }
 0x198   : > { %v3055_v6 = vpop.eup %3054  ;;  %v884_v11 = vsel %vm3617_vm10, %v3053_v2, 0.0  ;;  %v852_v52 = vadd.f32 %v3610_v12, %v820_v1 }
 0x199   : > { %v883_v14 = vsel %vm3621_vm11, %v3055_v6, 0.0  ;;  %3056 = vtanh.f32 %v853_v4 }
 0x19a   : > { %v890_v54 = vpack.c.bf16 %v884_v11, %v883_v14  ;;  %3058 = vtanh.f32 %v852_v52 }
 0x19c   : > { %v918_v16 = vunpack.c.l.b16 %v890_v54  ;;  %v813_v17 = vpop.f32.mrf.mxu1  ;;  %v919_v38 = vunpack.c.h.b16 %v890_v54 }
 0x19d   : > { %v823_v7 = vadd.f32 %v813_v17, %v744_v63  ;;  %v794_v19 = vpop.f32.mrf.mxu0  ;;  %v2896_v63 = vld [vmem:[%s4141_s2 + $0x20] sm:$0xff]  ;;  %v2899_v17 = vld [vmem:[%s4141_s2 + $0x38] sm:$0xff] }
 0x19e   : > { %v822_v20 = vadd.f32 %v794_v19, %v743_v5  ;;  %v924_v21 = vpack.c.b16 %v918_v16, %v916_v15  ;;  %v925_v37 = vpack.c.b16 %v919_v38, %v917_v41  ;;  %v2898_v5 = vld [vmem:[%s4141_s2 + $0x30] sm:$0xff]  ;;  %v2897_v16 = vld [vmem:[%s4141_s2 + $0x28] sm:$0xff] }
 0x19f   : > { %v3057_v22 = vpop.eup %3056  ;;  %v855_v23 = vadd.f32 %v846_v18, %v823_v7  ;;  %v2901_v7 = vld [vmem:[%s4141_s2 + $0x48] sm:$0xff] }
 0x1a0   : > { %v3059_v12 = vpop.eup %3058  ;;  %v886_v24 = vsel %vm3617_vm10, %v3057_v22, 0.0  ;;  %v854_v25 = vadd.f32 %v846_v18, %v822_v20  ;;  %928 = vrot.lane.b32.xlu0 %v924_v21, %s3303_s24  ;;  %v2900_v18 = vld [vmem:[%s4141_s2 + $0x40] sm:$0xff] }
 0x1a1   : > { %v885_v26 = vsel %vm3621_vm11, %v3059_v12, 0.0  ;;  %3060 = vtanh.f32 %v855_v23 }
 0x1a2   : > { %v891_v27 = vpack.c.bf16 %v886_v24, %v885_v26  ;;  %3062 = vtanh.f32 %v854_v25 }
 0x1a4   : > { %v920_v33 = vunpack.c.l.b16 %v891_v27  ;;  %v921_v34 = vunpack.c.h.b16 %v891_v27 }
 0x1a7   : > { %v3061_v28 = vpop.eup %3060 }
 0x1a8   : > { %v3063_v29 = vpop.eup %3062  ;;  %v888_v30 = vsel %vm3617_vm10, %v3061_v28, 0.0 }
 0x1a9   : > { %v887_v31 = vsel %vm3621_vm11, %v3063_v29, 0.0 }
 0x1aa   : > { %v892_v32 = vpack.c.bf16 %v888_v30, %v887_v31 }
 0x1ac   : > { %v922_v35 = vunpack.c.l.b16 %v892_v32  ;;  %v923_v36 = vunpack.c.h.b16 %v892_v32 }
 0x1ae   : > { %v927_v39 = vpack.c.b16 %v923_v36, %v921_v34  ;;  %v926_v40 = vpack.c.b16 %v922_v35, %v920_v33 }
 0x1b0   : > { %934 = vrot.lane.b32.xlu2 %v927_v39, %s3303_s24  ;;  %1032 = vmatpush.bf16.msrb.mxu1 %v927_v39 }
 0x1b1   : > { %932 = vrot.lane.b32.xlu1 %v926_v40, %s3303_s24  ;;  %1013 = vmatpush.bf16.msrb.mxu0 %v926_v40 }
 0x1b2   : > { %1066 = vrot.lane.b32.xlu0 %v927_v39, %s3304_s25 }
 0x1b4   : > { %1033 = vmatpush.bf16.msrb.mxu1 %v925_v37 }
 0x1b5   : > { %1014 = vmatpush.bf16.msrb.mxu0 %v924_v21 }
 0x1b7   : > { %2667 = vmatmul.msk.bf16.vlgmr.msrb.gmra.mxu1 %vm942_vm12, %v2892_v47 }
 0x1b8   : > { %1064 = vrot.lane.b32.xlu2 %v926_v40, %s3304_s25  ;;  %2665 = vmatmul.msk.bf16.vlgmr.msrb.gmra.mxu0 %vm942_vm12, %v2892_v47 }
 0x1b9   : > { %930 = vrot.lane.b32.xlu1 %v925_v37, %s3303_s24 }
 0x1ba   : > { %1226 = vrot.lane.b32.xlu0 %v926_v40, %s3306_s30 }
 0x1c0   : > { %1062 = vrot.lane.b32.xlu2 %v925_v37, %s3304_s25 }
 0x1c1   : > { %1060 = vrot.lane.b32.xlu1 %v924_v21, %s3304_s25 }
 0x1c2   : > { %1147 = vrot.lane.b32.xlu0 %v927_v39, %s3305_s27 }
 0x1c7   : > { %2668 = vmatmul.msk.bf16.gmra.mxu1 %vm942_vm12, %v2893_v51 }
 0x1c8   : > { %1145 = vrot.lane.b32.xlu2 %v926_v40, %s3305_s27  ;;  %2666 = vmatmul.msk.bf16.gmra.mxu0 %vm942_vm12, %v2893_v51 }
 0x1c9   : > { %1222 = vrot.lane.b32.xlu1 %v924_v21, %s3306_s30 }
 0x1ca   : > { %1141 = vrot.lane.b32.xlu0 %v924_v21, %s3305_s27 }
 0x1d0   : > { %1224 = vrot.lane.b32.xlu2 %v925_v37, %s3306_s30 }
 0x1d1   : > { %1228 = vrot.lane.b32.xlu1 %v927_v39, %s3306_s30 }
 0x1d2   : > { %1309 = vperm.xlu0 %3046, %v1291_v42  }
 0x1d8   : > { %1304 = vperm.xlu2 %3045, %v1290_v43  }
 0x1d9   : > { %1143 = vrot.lane.b32.xlu1 %v925_v37, %s3305_s27 }
 0x1e0   : > { %1299 = vperm.xlu2 %3045, %v1289_v44  }
 0x1e1   : > { %1294 = vperm.xlu1 %3047, %v1288_v45  }
 0x20a   : > { %v935_v46 = vpop.permute.xlu2 %934 }
 0x20b   : > { %974 = vmatpush.bf16.msra.mxu3 %v935_v46 }
 0x212   : > { %v929_v48 = vpop.permute.xlu0 %928  ;;  %v1065_v50 = vpop.permute.xlu2 %1064 }
 0x21a   : > { %v1063_v56 = vpop.permute.xlu2 %1062 }
 0x222   : > { %v1146_v1 = vpop.permute.xlu2 %1145 }
 0x223   : > { %v933_v49 = vpop.permute.xlu1 %932 }
 0x224   : > { %v937_v53 = vsel %vm473_vm3, %v933_v49, %v935_v46  ;;  %v1067_v55 = vpop.permute.xlu0 %1066  ;;  %v1329_v49 = vstv %s2717_s16 }
 0x225   : > { %955 = vmatpush.bf16.msra.mxu2 %v937_v53  ;;  %v1069_v61 = vsel %vm606_vm4, %v1065_v50, %v1067_v55 }
 0x22a   : > { %v1225_v52 = vpop.permute.xlu2 %1224 }
 0x22b   : > { %v931_v57 = vpop.permute.xlu1 %930 }
 0x22c   : > { %v1227_v59 = vpop.permute.xlu0 %1226  ;;  %975 = vmatpush.bf16.msra.mxu3 %v931_v57  ;;  %v936_v60 = vsel %vm473_vm3, %v929_v48, %v931_v57 }
 0x22d   : > { %956 = vmatpush.bf16.msra.mxu2 %v936_v60 }
 0x22f   : > { %2655 = vmatmul.msk.bf16.vlgmr.msra.gmra.mxu3 %vm942_vm12, %v2894_v58 }
 0x230   : > { %1105 = vmatpush.bf16.msrb.mxu3 %v1067_v55  ;;  %2653 = vmatmul.msk.bf16.vlgmr.msra.gmra.mxu2 %vm942_vm12, %v2894_v58 }
 0x231   : > { %1086 = vmatpush.bf16.msrb.mxu2 %v1069_v61 }
 0x232   : > { %v3748_v48 = vpop.permute.xlu2 %1304 }
 0x233   : > { %v1061_v0 = vpop.permute.xlu1 %1060 }
 0x234   : > { %1106 = vmatpush.bf16.msrb.mxu3 %v1063_v56  ;;  %v1148_v2 = vpop.permute.xlu0 %1147  ;;  %v1068_v3 = vsel %vm606_vm4, %v1061_v0, %v1063_v56  ;;  %v1035_v23 = vpop.f32.mrf.mxu1  ;;  %v1331_v0 = vadd.s32 %v1329_v49, %v3613_v13 }
 0x235   : > { %v1150_v4 = vsel %vm685_vm2, %v1146_v1, %v1148_v2  ;;  %1186 = vmatpush.bf16.msra.mxu1 %v1148_v2  ;;  %1087 = vmatpush.bf16.msrb.mxu2 %v1068_v3  ;;  %v1016_v24 = vpop.f32.mrf.mxu0 }
 0x236   : > { %1167 = vmatpush.bf16.msra.mxu0 %v1150_v4  ;;  %v1330_v4 = vadd.s32 %v1329_v49, %v3607_v9  ;;  %vm1333_vm13 = vcmp.ge.s32.totalorder %v1331_v0, 0  ;;  %vm1335_vm14 = vcmp.lt.s32.totalorder %v1331_v0, 256 }
 0x237   : > { %vm3752_vm1 = vmand %vm1333_vm13, %vm1335_vm14 }
 0x238   : > { %vm1332_vm15 = vcmp.ge.s32.totalorder %v1330_v4, 0  ;;  %vm1334_vm0 = vcmp.lt.s32.totalorder %v1330_v4, 256 }
 0x239   : > { %vm3756_vm6 = vmand %vm1332_vm15, %vm1334_vm0 }
 0x23b   : > { %v1223_v6 = vpop.permute.xlu1 %1222 }
 0x23c   : > { %v1230_v62 = vsel %vm764_vm5, %v1223_v6, %v1225_v52  ;;  %v1142_v14 = vpop.permute.xlu0 %1141  ;;  %v1037_v28 = vpop.f32.mrf.mxu1 }
 0x23d   : > { %v1018_v29 = vpop.f32.mrf.mxu0 }
 0x23f   : > { %2656 = vmatmul.msk.bf16.gmra.mxu3 %vm942_vm12, %v2895_v8 }
 0x240   : > { %2654 = vmatmul.msk.bf16.gmra.mxu2 %vm942_vm12, %v2895_v8 }
 0x243   : > { %v1229_v10 = vpop.permute.xlu1 %1228 }
 0x244   : > { %v1231_v11 = vsel %vm764_vm5, %v1227_v59, %v1229_v10  ;;  %1267 = vmatpush.bf16.msra.mxu3 %v1229_v10  ;;  %v1040_v32 = vpop.f32.mrf.mxu1 }
 0x245   : > { %1248 = vmatpush.bf16.msra.mxu2 %v1231_v11  ;;  %v1021_v33 = vpop.f32.mrf.mxu0 }
 0x248   : > { %1268 = vmatpush.bf16.msra.mxu3 %v1225_v52 }
 0x249   : > { %1249 = vmatpush.bf16.msra.mxu2 %v1230_v62 }
 0x24b   : > { %v1144_v54 = vpop.permute.xlu1 %1143 }
 0x24c   : > { %1187 = vmatpush.bf16.msra.mxu1 %v1144_v54  ;;  %v1149_v15 = vsel %vm685_vm2, %v1142_v14, %v1144_v54  ;;  %v3739_v36 = vpop.f32.mrf.mxu1 }
 0x24d   : > { %1168 = vmatpush.bf16.msra.mxu0 %v1149_v15  ;;  %v3741_v38 = vpop.f32.mrf.mxu0 }
 0x24f   : > { %2683 = vmatmul.msk.bf16.vlgmr.msrb.gmra.mxu3 %vm942_vm12, %v2896_v63  ;;  %2699 = vmatmul.msk.bf16.vlgmr.msra.gmra.mxu1 %vm942_vm12, %v2898_v5 }
 0x250   : > { %2681 = vmatmul.msk.bf16.vlgmr.msrb.gmra.mxu2 %vm942_vm12, %v2896_v63  ;;  %2697 = vmatmul.msk.bf16.vlgmr.msra.gmra.mxu0 %vm942_vm12, %v2898_v5  ;;  %v1300_v5 = vpop.permute.xlu2 %1299 }
 0x253   : > { %v1295_v60 = vpop.permute.xlu1 %1294 }
 0x25f   : > { %2684 = vmatmul.msk.bf16.gmra.mxu3 %vm942_vm12, %v2897_v16  ;;  %2700 = vmatmul.msk.bf16.gmra.mxu1 %vm942_vm12, %v2899_v17 }
 0x260   : > { %2682 = vmatmul.msk.bf16.gmra.mxu2 %vm942_vm12, %v2897_v16  ;;  %2698 = vmatmul.msk.bf16.gmra.mxu0 %vm942_vm12, %v2899_v17  ;;  %v1751_v17 = vld [vmem:[%s4197_s12 + $0x18] sm:$0xff] }
 0x26f   : > { %2715 = vmatmul.msk.bf16.vlgmr.msra.gmra.mxu3 %vm942_vm12, %v2900_v18 }
 0x270   : > { %2713 = vmatmul.msk.bf16.vlgmr.msra.gmra.mxu2 %vm942_vm12, %v2900_v18 }
 0x27f   : > { %2716 = vmatmul.msk.bf16.gmra.mxu3 %vm942_vm12, %v2901_v7 }
 0x280   : > { %2714 = vmatmul.msk.bf16.gmra.mxu2 %vm942_vm12, %v2901_v7 }
 0x2b2   : > { %v977_v19 = vpop.f32.mrf.mxu3 }
 0x2b3   : > { %v958_v20 = vpop.f32.mrf.mxu2  ;;  %v1036_v43 = vadd.f32 %v1035_v23, %v977_v19 }
 0x2b4   : > { %v1017_v45 = vadd.f32 %v1016_v24, %v958_v20 }
 0x2ba   : > { %v979_v21 = vpop.f32.mrf.mxu3 }
 0x2bb   : > { %v960_v22 = vpop.f32.mrf.mxu2  ;;  %v1038_v56 = vadd.f32 %v1037_v28, %v979_v21 }
 0x2bc   : > { %v1019_v61 = vadd.f32 %v1018_v29, %v960_v22 }
 0x2c2   : > { %v982_v12 = vpop.f32.mrf.mxu3 }
 0x2c3   : > { %v963_v25 = vpop.f32.mrf.mxu2  ;;  %v1041_v62 = vadd.f32 %v1040_v32, %v982_v12 }
 0x2c4   : > { %v1022_v15 = vadd.f32 %v1021_v33, %v963_v25 }
 0x2ca   : > { %v3735_v26 = vpop.f32.mrf.mxu3 }
 0x2cb   : > { %v3737_v27 = vpop.f32.mrf.mxu2  ;;  %v1043_v32 = vadd.f32 %v3739_v36, %v3735_v26 }
 0x2cc   : > { %v1189_v41 = vpop.f32.mrf.mxu1 }
 0x2cd   : > { %v1170_v37 = vpop.f32.mrf.mxu0 }
 0x2d2   : > { %v1108_v30 = vpop.f32.mrf.mxu3 }
 0x2d3   : > { %v1089_v31 = vpop.f32.mrf.mxu2  ;;  %v1119_v46 = vadd.f32 %v1108_v30, %v1036_v43 }
 0x2d4   : > { %v1118_v47 = vadd.f32 %v1089_v31, %v1017_v45  ;;  %v1191_v55 = vpop.f32.mrf.mxu1 }
 0x2d5   : > { %v1200_v50 = vadd.f32 %v1189_v41, %v1119_v46  ;;  %v1172_v57 = vpop.f32.mrf.mxu0 }
 0x2d6   : > { %v1199_v53 = vadd.f32 %v1170_v37, %v1118_v47 }
 0x2da   : > { %v1110_v34 = vpop.f32.mrf.mxu3 }
 0x2db   : > { %v1091_v35 = vpop.f32.mrf.mxu2  ;;  %v1121_v2 = vadd.f32 %v1110_v34, %v1038_v56  ;;  %v1310_v56 = vpop.permute.xlu0 %1309 }
 0x2dc   : > { %v1120_v6 = vadd.f32 %v1091_v35, %v1019_v61  ;;  %v1194_v16 = vpop.f32.mrf.mxu1  ;;  %v1024_v35 = vadd.f32 %v3741_v38, %v3737_v27 }
 0x2dd   : > { %v1202_v10 = vadd.f32 %v1191_v55, %v1121_v2  ;;  %v1175_v20 = vpop.f32.mrf.mxu0 }
 0x2de   : > { %v1201_v11 = vadd.f32 %v1172_v57, %v1120_v6 }
 0x2e2   : > { %v1113_v39 = vpop.f32.mrf.mxu3 }
 0x2e3   : > { %v1094_v40 = vpop.f32.mrf.mxu2  ;;  %v1123_v19 = vadd.f32 %v1113_v39, %v1041_v62 }
 0x2e4   : > { %v1122_v23 = vadd.f32 %v1094_v40, %v1022_v15  ;;  %v1196_v46 = vpop.f32.mrf.mxu1 }
 0x2e5   : > { %v1204_v29 = vadd.f32 %v1194_v16, %v1123_v19  ;;  %v1177_v36 = vpop.f32.mrf.mxu0  ;;  %v1748_v19 = vld [vmem:[%s4197_s12] sm:$0xff] }
 0x2e6   : > { %v1203_v30 = vadd.f32 %v1175_v20, %v1122_v23  ;;  %v2902_v20 = vld [vmem:[%s4198_s9] sm:$0xff] }
 0x2ea   : > { %v3743_v42 = vpop.f32.mrf.mxu3 }
 0x2eb   : > { %v3745_v44 = vpop.f32.mrf.mxu2  ;;  %v1125_v41 = vadd.f32 %v3743_v42, %v1043_v32 }
 0x2ec   : > { %v1124_v45 = vadd.f32 %v3745_v44, %v1024_v35 }
 0x2ed   : > { %v1206_v38 = vadd.f32 %v1196_v46, %v1125_v41  ;;  %v2908_v46 = vld [vmem:[%s4198_s9 + $0x30] sm:$0xff] }
 0x2ee   : > { %v1205_v42 = vadd.f32 %v1177_v36, %v1124_v45 }
 0x2f2   : > { %v1270_v51 = vpop.f32.mrf.mxu3 }
 0x2f3   : > { %v1281_v58 = vadd.f32 %v1270_v51, %v1200_v50  ;;  %v1251_v59 = vpop.f32.mrf.mxu2 }
 0x2f4   : > { %v1280_v1 = vadd.f32 %v1251_v59, %v1199_v53 }
 0x2f5   : > { %v1313_v3 = vadd.f32 %v1295_v60, %v1281_v58 }
 0x2f6   : > { %v1312_v8 = vadd.f32 %v1295_v60, %v1280_v1 }
 0x2f7   : > { %3064 = vtanh.f32 %v1313_v3 }
 0x2f8   : > { %3066 = vtanh.f32 %v1312_v8 }
 0x2fa   : > { %v1272_v52 = vpop.f32.mrf.mxu3 }
 0x2fb   : > { %v1283_v54 = vadd.f32 %v1272_v52, %v1202_v10  ;;  %v1253_v63 = vpop.f32.mrf.mxu2 }
 0x2fc   : > { %v1282_v18 = vadd.f32 %v1253_v63, %v1201_v11 }
 0x2fd   : > { %v3065_v7 = vpop.eup %3064  ;;  %v1315_v21 = vadd.f32 %v1300_v5, %v1283_v54 }
 0x2fe   : > { %v3067_v22 = vpop.eup %3066  ;;  %v1343_v12 = vsel %vm3752_vm1, %v3065_v7, 0.0  ;;  %v1314_v24 = vadd.f32 %v1300_v5, %v1282_v18  ;;  %v1750_v18 = vld [vmem:[%s4197_s12 + $0x10] sm:$0xff]  ;;  %v1749_v7 = vld [vmem:[%s4197_s12 + $0x8] sm:$0xff] }
 0x2ff   : > { %v1342_v28 = vsel %vm3756_vm6, %v3067_v22, 0.0  ;;  %3068 = vtanh.f32 %v1315_v21  ;;  %v2903_v21 = vld [vmem:[%s4198_s9 + $0x8] sm:$0xff] }
 0x300   : > { %v1350_v25 = vpack.c.bf16 %v1343_v12, %v1342_v28  ;;  %3070 = vtanh.f32 %v1314_v24 }
 0x302   : > { %v1275_v31 = vpop.f32.mrf.mxu3  ;;  %v1377_v49 = vunpack.c.l.b16 %v1350_v25  ;;  %v1378_v16 = vunpack.c.h.b16 %v1350_v25 }
 0x303   : > { %v1285_v33 = vadd.f32 %v1275_v31, %v1204_v29  ;;  %v1256_v34 = vpop.f32.mrf.mxu2  ;;  %v2904_v31 = vld [vmem:[%s4198_s9 + $0x10] sm:$0xff] }
 0x304   : > { %v1284_v39 = vadd.f32 %v1256_v34, %v1203_v30 }
 0x305   : > { %v3069_v40 = vpop.eup %3068  ;;  %v1317_v37 = vadd.f32 %v3748_v48, %v1285_v33 }
 0x306   : > { %v3071_v43 = vpop.eup %3070  ;;  %v1345_v47 = vsel %vm3752_vm1, %v3069_v40, 0.0  ;;  %v1316_v26 = vadd.f32 %v3748_v48, %v1284_v39 }
 0x307   : > { %v1344_v50 = vsel %vm3756_vm6, %v3071_v43, 0.0  ;;  %3072 = vtanh.f32 %v1317_v37  ;;  %v2905_v37 = vld [vmem:[%s4198_s9 + $0x18] sm:$0xff] }
 0x308   : > { %v1351_v27 = vpack.c.bf16 %v1345_v47, %v1344_v50  ;;  %3074 = vtanh.f32 %v1316_v26 }
 0x30a   : > { %v1277_v53 = vpop.f32.mrf.mxu3  ;;  %v1379_v55 = vunpack.c.l.b16 %v1351_v27  ;;  %v1380_v15 = vunpack.c.h.b16 %v1351_v27 }
 0x30b   : > { %v1287_v51 = vadd.f32 %v1277_v53, %v1206_v38  ;;  %v1258_v44 = vpop.f32.mrf.mxu2  ;;  %v2909_v53 = vld [vmem:[%s4198_s9 + $0x38] sm:$0xff] }
 0x30c   : > { %v1286_v57 = vadd.f32 %v1258_v44, %v1205_v42  ;;  %v1385_v58 = vpack.c.b16 %v1379_v55, %v1377_v49  ;;  %v1386_v14 = vpack.c.b16 %v1380_v15, %v1378_v16  ;;  %v2906_v42 = vld [vmem:[%s4198_s9 + $0x20] sm:$0xff]  ;;  %v2907_v55 = vld [vmem:[%s4198_s9 + $0x28] sm:$0xff] }
 0x30d   : > { %v3073_v59 = vpop.eup %3072  ;;  %v1319_v60 = vadd.f32 %v1310_v56, %v1287_v51  ;;  %v2910_v51 = vld [vmem:[%s4198_s9 + $0x40] sm:$0xff]  ;;  %v2911_v44 = vld [vmem:[%s4198_s9 + $0x48] sm:$0xff] }
 0x30e   : > { %v3075_v48 = vpop.eup %3074  ;;  %v1347_v61 = vsel %vm3752_vm1, %v3073_v59, 0.0  ;;  %v1318_v0 = vadd.f32 %v1310_v56, %v1286_v57  ;;  %1389 = vrot.lane.b32.xlu2 %v1385_v58, %s3303_s24 }
 0x30f   : > { %v1346_v1 = vsel %vm3756_vm6, %v3075_v48, 0.0  ;;  %3076 = vtanh.f32 %v1319_v60 }
 0x310   : > { %v1352_v2 = vpack.c.bf16 %v1347_v61, %v1346_v1  ;;  %3078 = vtanh.f32 %v1318_v0 }
 0x312   : > { %v1381_v11 = vunpack.c.l.b16 %v1352_v2  ;;  %v1382_v52 = vunpack.c.h.b16 %v1352_v2 }
 0x315   : > { %v3077_v3 = vpop.eup %3076 }
 0x316   : > { %v3079_v4 = vpop.eup %3078  ;;  %v1349_v6 = vsel %vm3752_vm1, %v3077_v3, 0.0 }
 0x317   : > { %v1348_v8 = vsel %vm3756_vm6, %v3079_v4, 0.0 }
 0x318   : > { %v1353_v10 = vpack.c.bf16 %v1349_v6, %v1348_v8 }
 0x31a   : > { %v1383_v62 = vunpack.c.l.b16 %v1353_v10  ;;  %v1384_v54 = vunpack.c.h.b16 %v1353_v10 }
 0x31c   : > { %v1388_v63 = vpack.c.b16 %v1384_v54, %v1382_v52  ;;  %v1387_v5 = vpack.c.b16 %v1383_v62, %v1381_v11 }
 0x31e   : > { %1395 = vrot.lane.b32.xlu1 %v1388_v63, %s3303_s24  ;;  %1492 = vmatpush.bf16.msrb.mxu3 %v1388_v63 }
 0x31f   : > { %1393 = vrot.lane.b32.xlu0 %v1387_v5, %s3303_s24  ;;  %1473 = vmatpush.bf16.msrb.mxu2 %v1387_v5 }
 0x320   : > { %1526 = vrot.lane.b32.xlu2 %v1388_v63, %s3304_s25 }
 0x322   : > { %1493 = vmatpush.bf16.msrb.mxu3 %v1386_v14 }
 0x323   : > { %1474 = vmatpush.bf16.msrb.mxu2 %v1385_v58 }
 0x325   : > { %2744 = vmatmul.msk.bf16.vlgmr.msrb.gmra.mxu3 %vm942_vm12, %v2902_v20 }
 0x326   : > { %1524 = vrot.lane.b32.xlu1 %v1387_v5, %s3304_s25  ;;  %2742 = vmatmul.msk.bf16.vlgmr.msrb.gmra.mxu2 %vm942_vm12, %v2902_v20 }
 0x327   : > { %1391 = vrot.lane.b32.xlu0 %v1386_v14, %s3303_s24 }
 0x328   : > { %1605 = vrot.lane.b32.xlu2 %v1387_v5, %s3305_s27 }
 0x32e   : > { %1522 = vrot.lane.b32.xlu1 %v1386_v14, %s3304_s25 }
 0x32f   : > { %1520 = vrot.lane.b32.xlu0 %v1385_v58, %s3304_s25 }
 0x330   : > { %1603 = vrot.lane.b32.xlu2 %v1386_v14, %s3305_s27 }
 0x335   : > { %2745 = vmatmul.msk.bf16.gmra.mxu3 %vm942_vm12, %v2903_v21 }
 0x336   : > { %1601 = vrot.lane.b32.xlu1 %v1385_v58, %s3305_s27  ;;  %2743 = vmatmul.msk.bf16.gmra.mxu2 %vm942_vm12, %v2903_v21 }
 0x337   : > { %1607 = vrot.lane.b32.xlu0 %v1388_v63, %s3305_s27 }
 0x338   : > { %1682 = vrot.lane.b32.xlu2 %v1385_v58, %s3306_s30 }
 0x33e   : > { %1688 = vrot.lane.b32.xlu1 %v1388_v63, %s3306_s30 }
 0x33f   : > { %1686 = vrot.lane.b32.xlu0 %v1387_v5, %s3306_s30 }
 0x340   : > { %1769 = vperm.xlu2 %3045, %v1751_v17  }
 0x346   : > { %1764 = vperm.xlu1 %3047, %v1750_v18  }
 0x347   : > { %1684 = vrot.lane.b32.xlu0 %v1386_v14, %s3306_s30 }
 0x34e   : > { %1759 = vperm.xlu1 %3047, %v1749_v7  }
 0x34f   : > { %1754 = vperm.xlu0 %3046, %v1748_v19  }
 0x368   : > { %v1390_v22 = vpop.permute.xlu2 %1389 }
 0x37a   : > { %v1527_v28 = vpop.permute.xlu2 %1526 }
 0x382   : > { %v1606_v39 = vpop.permute.xlu2 %1605 }
 0x38a   : > { %v1604_v45 = vpop.permute.xlu2 %1603 }
 0x390   : > { %v1396_v23 = vpop.permute.xlu1 %1395 }
 0x391   : > { %v1394_v12 = vpop.permute.xlu0 %1393  ;;  %1434 = vmatpush.bf16.msrb.mxu1 %v1396_v23 }
 0x392   : > { %v1398_v24 = vsel %vm473_vm3, %v1394_v12, %v1396_v23  ;;  %v1683_v27 = vpop.permute.xlu2 %1682  ;;  %v1789_v12 = vstv %s2794_s5  ;;  %s4204_s5 = sld [smem:[#allocation21_spill]] }
 0x393   : > { %1415 = vmatpush.bf16.msrb.mxu0 %v1398_v24 }
 0x398   : > { %v1525_v25 = vpop.permute.xlu1 %1524 }
 0x399   : > { %v1529_v29 = vsel %vm606_vm4, %v1525_v25, %v1527_v28  ;;  %v1392_v30 = vpop.permute.xlu0 %1391 }
 0x39a   : > { %1435 = vmatpush.bf16.msrb.mxu1 %v1392_v30  ;;  %v1397_v32 = vsel %vm473_vm3, %v1390_v22, %v1392_v30 }
 0x39b   : > { %1416 = vmatpush.bf16.msrb.mxu0 %v1397_v32 }
 0x39d   : > { %2732 = vmatmul.msk.bf16.vlgmr.msrb.gmra.mxu1 %vm942_vm12, %v2904_v31 }
 0x39e   : > { %1565 = vmatpush.bf16.msra.mxu1 %v1527_v28  ;;  %2730 = vmatmul.msk.bf16.vlgmr.msrb.gmra.mxu0 %vm942_vm12, %v2904_v31 }
 0x39f   : > { %1546 = vmatpush.bf16.msra.mxu0 %v1529_v29 }
 0x3a0   : > { %v1523_v33 = vpop.permute.xlu1 %1522 }
 0x3a1   : > { %v1521_v34 = vpop.permute.xlu0 %1520 }
 0x3a2   : > { %1566 = vmatpush.bf16.msra.mxu1 %v1523_v33  ;;  %v1528_v35 = vsel %vm606_vm4, %v1521_v34, %v1523_v33 }
 0x3a3   : > { %1547 = vmatpush.bf16.msra.mxu0 %v1528_v35  ;;  %v1791_v35 = vadd.s32 %v1789_v12, %v3613_v13 }
 0x3a5   : > { %vm1793_vm7 = vcmp.ge.s32.totalorder %v1791_v35, 0  ;;  %vm1795_vm8 = vcmp.lt.s32.totalorder %v1791_v35, 256 }
 0x3a6   : > { %vm3887_vm11 = vmand %vm1793_vm7, %vm1795_vm8 }
 0x3a8   : > { %v1602_v40 = vpop.permute.xlu1 %1601  ;;  %v1495_v60 = vpop.f32.mrf.mxu3 }
 0x3a9   : > { %v1608_v41 = vpop.permute.xlu0 %1607  ;;  %v1609_v47 = vsel %vm685_vm2, %v1602_v40, %v1604_v45  ;;  %v1476_v61 = vpop.f32.mrf.mxu2 }
 0x3aa   : > { %v1610_v43 = vsel %vm685_vm2, %v1606_v39, %v1608_v41  ;;  %1646 = vmatpush.bf16.msra.mxu3 %v1608_v41 }
 0x3ab   : > { %1627 = vmatpush.bf16.msra.mxu2 %v1610_v43 }
 0x3ad   : > { %2733 = vmatmul.msk.bf16.gmra.mxu1 %vm942_vm12, %v2905_v37 }
 0x3ae   : > { %2731 = vmatmul.msk.bf16.gmra.mxu0 %vm942_vm12, %v2905_v37  ;;  %1647 = vmatpush.bf16.msra.mxu3 %v1604_v45  ;;  %v1790_v37 = vadd.s32 %v1789_v12, %v3607_v9 }
 0x3af   : > { %1628 = vmatpush.bf16.msra.mxu2 %v1609_v47 }
 0x3b0   : > { %v1689_v26 = vpop.permute.xlu1 %1688  ;;  %v1497_v3 = vpop.f32.mrf.mxu3  ;;  %vm1792_vm9 = vcmp.ge.s32.totalorder %v1790_v37, 0  ;;  %vm1794_vm10 = vcmp.lt.s32.totalorder %v1790_v37, 256 }
 0x3b1   : > { %v1687_v36 = vpop.permute.xlu0 %1686  ;;  %1727 = vmatpush.bf16.msrb.mxu1 %v1689_v26  ;;  %2776 = vmatmul.msk.bf16.vlgmr.msra.gmra.mxu3 %vm942_vm12, %v2908_v46  ;;  %v1478_v4 = vpop.f32.mrf.mxu2  ;;  %vm3891_vm13 = vmand %vm1792_vm9, %vm1794_vm10 }
 0x3b2   : > { %v1691_v50 = vsel %vm764_vm5, %v1687_v36, %v1689_v26  ;;  %2774 = vmatmul.msk.bf16.vlgmr.msra.gmra.mxu2 %vm942_vm12, %v2908_v46 }
 0x3b3   : > { %1708 = vmatpush.bf16.msrb.mxu0 %v1691_v50 }
 0x3b8   : > { %v1500_v10 = vpop.f32.mrf.mxu3  ;;  %v3883_v22 = vpop.permute.xlu1 %1764 }
 0x3b9   : > { %v1685_v38 = vpop.permute.xlu0 %1684  ;;  %v1481_v11 = vpop.f32.mrf.mxu2 }
 0x3ba   : > { %1728 = vmatpush.bf16.msrb.mxu1 %v1685_v38  ;;  %v1690_v49 = vsel %vm764_vm5, %v1683_v27, %v1685_v38 }
 0x3bb   : > { %1709 = vmatpush.bf16.msrb.mxu0 %v1690_v49 }
 0x3bd   : > { %2760 = vmatmul.msk.bf16.vlgmr.msra.gmra.mxu1 %vm942_vm12, %v2906_v42 }
 0x3be   : > { %2758 = vmatmul.msk.bf16.vlgmr.msra.gmra.mxu0 %vm942_vm12, %v2906_v42 }
 0x3c0   : > { %v3874_v54 = vpop.f32.mrf.mxu3  ;;  %v1760_v42 = vpop.permute.xlu1 %1759 }
 0x3c1   : > { %2777 = vmatmul.msk.bf16.gmra.mxu3 %vm942_vm12, %v2909_v53  ;;  %v3876_v63 = vpop.f32.mrf.mxu2  ;;  %v1755_v33 = vpop.permute.xlu0 %1754 }
 0x3c2   : > { %2775 = vmatmul.msk.bf16.gmra.mxu2 %vm942_vm12, %v2909_v53 }
 0x3cd   : > { %2761 = vmatmul.msk.bf16.gmra.mxu1 %vm942_vm12, %v2907_v55 }
 0x3ce   : > { %2759 = vmatmul.msk.bf16.gmra.mxu0 %vm942_vm12, %v2907_v55  ;;  %v2211_v55 = vld [vmem:[%s4203_s10 + $0x18] sm:$0xff] }
 0x3dd   : > { %2792 = vmatmul.msk.bf16.vlgmr.msrb.gmra.mxu1 %vm942_vm12, %v2910_v51 }
 0x3de   : > { %2790 = vmatmul.msk.bf16.vlgmr.msrb.gmra.mxu0 %vm942_vm12, %v2910_v51 }
 0x3ed   : > { %2793 = vmatmul.msk.bf16.gmra.mxu1 %vm942_vm12, %v2911_v44 }
 0x3ee   : > { %2791 = vmatmul.msk.bf16.gmra.mxu0 %vm942_vm12, %v2911_v44 }
 0x41a   : > { %v1437_v56 = vpop.f32.mrf.mxu1 }
 0x41b   : > { %v1418_v57 = vpop.f32.mrf.mxu0  ;;  %v1496_v18 = vadd.f32 %v1495_v60, %v1437_v56 }
 0x41c   : > { %v1477_v19 = vadd.f32 %v1476_v61, %v1418_v57 }
 0x422   : > { %v1439_v58 = vpop.f32.mrf.mxu1 }
 0x423   : > { %v1420_v59 = vpop.f32.mrf.mxu0  ;;  %v1498_v29 = vadd.f32 %v1497_v3, %v1439_v58 }
 0x424   : > { %v1479_v34 = vadd.f32 %v1478_v4, %v1420_v59 }
 0x42a   : > { %v1442_v48 = vpop.f32.mrf.mxu1 }
 0x42b   : > { %v1423_v0 = vpop.f32.mrf.mxu0  ;;  %v1501_v36 = vadd.f32 %v1500_v10, %v1442_v48 }
 0x42c   : > { %v1482_v49 = vadd.f32 %v1481_v11, %v1423_v0 }
 0x432   : > { %v3870_v1 = vpop.f32.mrf.mxu1 }
 0x433   : > { %v3872_v2 = vpop.f32.mrf.mxu0  ;;  %v1503_v10 = vadd.f32 %v3874_v54, %v3870_v1 }
 0x434   : > { %v1649_v16 = vpop.f32.mrf.mxu3 }
 0x435   : > { %v1630_v14 = vpop.f32.mrf.mxu2 }
 0x43a   : > { %v1568_v6 = vpop.f32.mrf.mxu1 }
 0x43b   : > { %v1549_v8 = vpop.f32.mrf.mxu0  ;;  %v1579_v20 = vadd.f32 %v1568_v6, %v1496_v18 }
 0x43c   : > { %v1578_v21 = vadd.f32 %v1549_v8, %v1477_v19  ;;  %v1651_v28 = vpop.f32.mrf.mxu3 }
 0x43d   : > { %v1660_v23 = vadd.f32 %v1649_v16, %v1579_v20  ;;  %v1632_v30 = vpop.f32.mrf.mxu2 }
 0x43e   : > { %v1659_v24 = vadd.f32 %v1630_v14, %v1578_v21 }
 0x442   : > { %v1570_v52 = vpop.f32.mrf.mxu1 }
 0x443   : > { %v1551_v62 = vpop.f32.mrf.mxu0  ;;  %v1581_v40 = vadd.f32 %v1570_v52, %v1498_v29  ;;  %v1770_v29 = vpop.permute.xlu2 %1769 }
 0x444   : > { %v1580_v43 = vadd.f32 %v1551_v62, %v1479_v34  ;;  %v1654_v53 = vpop.f32.mrf.mxu3  ;;  %v1484_v62 = vadd.f32 %v3876_v63, %v3872_v2 }
 0x445   : > { %v1662_v46 = vadd.f32 %v1651_v28, %v1581_v40  ;;  %v1635_v57 = vpop.f32.mrf.mxu2 }
 0x446   : > { %v1661_v47 = vadd.f32 %v1632_v30, %v1580_v43 }
 0x44a   : > { %v1573_v5 = vpop.f32.mrf.mxu1 }
 0x44b   : > { %v1554_v15 = vpop.f32.mrf.mxu0  ;;  %v1583_v56 = vadd.f32 %v1573_v5, %v1501_v36 }
 0x44c   : > { %v1582_v60 = vadd.f32 %v1554_v15, %v1482_v49  ;;  %v1656_v20 = vpop.f32.mrf.mxu3 }
 0x44d   : > { %v1664_v4 = vadd.f32 %v1654_v53, %v1583_v56  ;;  %v1637_v54 = vpop.f32.mrf.mxu2  ;;  %v2208_v56 = vld [vmem:[%s4203_s10] sm:$0xff] }
 0x44e   : > { %v1663_v6 = vadd.f32 %v1635_v57, %v1582_v60 }
 0x452   : > { %v3878_v17 = vpop.f32.mrf.mxu1 }
 0x453   : > { %v3880_v7 = vpop.f32.mrf.mxu0  ;;  %v1585_v16 = vadd.f32 %v3878_v17, %v1503_v10 }
 0x454   : > { %v1584_v19 = vadd.f32 %v3880_v7, %v1484_v62 }
 0x455   : > { %v1666_v63 = vadd.f32 %v1656_v20, %v1585_v16 }
 0x456   : > { %v1665_v17 = vadd.f32 %v1637_v54, %v1584_v19  ;;  %v2915_v19 = vld [vmem:[%s4204_s5 + $0x18] sm:$0xff] }
 0x45a   : > { %v1730_v25 = vpop.f32.mrf.mxu1 }
 0x45b   : > { %v1741_v31 = vadd.f32 %v1730_v25, %v1660_v23  ;;  %v1711_v32 = vpop.f32.mrf.mxu0 }
 0x45c   : > { %v1740_v39 = vadd.f32 %v1711_v32, %v1659_v24 }
 0x45d   : > { %v1773_v41 = vadd.f32 %v1755_v33, %v1741_v31 }
 0x45e   : > { %v1772_v45 = vadd.f32 %v1755_v33, %v1740_v39 }
 0x45f   : > { %3080 = vtanh.f32 %v1773_v41 }
 0x460   : > { %3082 = vtanh.f32 %v1772_v45 }
 0x462   : > { %v1732_v26 = vpop.f32.mrf.mxu1 }
 0x463   : > { %v1743_v27 = vadd.f32 %v1732_v26, %v1662_v46  ;;  %v1713_v38 = vpop.f32.mrf.mxu0 }
 0x464   : > { %v1742_v51 = vadd.f32 %v1713_v38, %v1661_v47 }
 0x465   : > { %v3081_v44 = vpop.eup %3080  ;;  %v1775_v58 = vadd.f32 %v1760_v42, %v1743_v27 }
 0x466   : > { %v3083_v59 = vpop.eup %3082  ;;  %v1803_v48 = vsel %vm3887_vm11, %v3081_v44, 0.0  ;;  %v1774_v61 = vadd.f32 %v1760_v42, %v1742_v51  ;;  %v2210_v51 = vld [vmem:[%s4203_s10 + $0x10] sm:$0xff]  ;;  %v2209_v44 = vld [vmem:[%s4203_s10 + $0x8] sm:$0xff] }
 0x467   : > { %v1802_v3 = vsel %vm3891_vm13, %v3083_v59, 0.0  ;;  %3084 = vtanh.f32 %v1775_v58  ;;  %v2912_v58 = vld [vmem:[%s4204_s5] sm:$0xff] }
 0x468   : > { %v1810_v0 = vpack.c.bf16 %v1803_v48, %v1802_v3  ;;  %3086 = vtanh.f32 %v1774_v61  ;;  %v2913_v61 = vld [vmem:[%s4204_s5 + $0x8] sm:$0xff] }
 0x46a   : > { %v1735_v8 = vpop.f32.mrf.mxu1  ;;  %v1837_v12 = vunpack.c.l.b16 %v1810_v0  ;;  %v1838_v53 = vunpack.c.h.b16 %v1810_v0 }
 0x46b   : > { %v1745_v11 = vadd.f32 %v1735_v8, %v1664_v4  ;;  %v1716_v52 = vpop.f32.mrf.mxu0  ;;  %v2914_v8 = vld [vmem:[%s4204_s5 + $0x10] sm:$0xff] }
 0x46c   : > { %v1744_v5 = vadd.f32 %v1716_v52, %v1663_v6 }
 0x46d   : > { %v3085_v15 = vpop.eup %3084  ;;  %v1777_v14 = vadd.f32 %v3883_v22, %v1745_v11 }
 0x46e   : > { %v3087_v18 = vpop.eup %3086  ;;  %v1805_v21 = vsel %vm3887_vm11, %v3085_v15, 0.0  ;;  %v1776_v1 = vadd.f32 %v3883_v22, %v1744_v5 }
 0x46f   : > { %v1804_v23 = vsel %vm3891_vm13, %v3087_v18, 0.0  ;;  %3088 = vtanh.f32 %v1777_v14 }
 0x470   : > { %v1811_v2 = vpack.c.bf16 %v1805_v21, %v1804_v23  ;;  %3090 = vtanh.f32 %v1776_v1  ;;  %v2918_v21 = vld [vmem:[%s4204_s5 + $0x30] sm:$0xff] }
 0x472   : > { %v1839_v24 = vunpack.c.l.b16 %v1811_v2  ;;  %v1737_v28 = vpop.f32.mrf.mxu1  ;;  %v1840_v38 = vunpack.c.h.b16 %v1811_v2 }
 0x473   : > { %v1747_v25 = vadd.f32 %v1737_v28, %v1666_v63  ;;  %v1718_v7 = vpop.f32.mrf.mxu0  ;;  %v2917_v28 = vld [vmem:[%s4204_s5 + $0x28] sm:$0xff] }
 0x474   : > { %v1746_v30 = vadd.f32 %v1718_v7, %v1665_v17  ;;  %v1845_v31 = vpack.c.b16 %v1839_v24, %v1837_v12  ;;  %v1846_v50 = vpack.c.b16 %v1840_v38, %v1838_v53  ;;  %v2916_v12 = vld [vmem:[%s4204_s5 + $0x20] sm:$0xff]  ;;  %v2919_v24 = vld [vmem:[%s4204_s5 + $0x38] sm:$0xff]  ;;  %v2921_v7 = vld [vmem:[%s4204_s5 + $0x48] sm:$0xff] }
 0x475   : > { %v3089_v32 = vpop.eup %3088  ;;  %v1779_v33 = vadd.f32 %v1770_v29, %v1747_v25  ;;  %v2920_v25 = vld [vmem:[%s4204_s5 + $0x40] sm:$0xff] }
 0x476   : > { %v3091_v22 = vpop.eup %3090  ;;  %v1807_v34 = vsel %vm3887_vm11, %v3089_v32, 0.0  ;;  %v1778_v35 = vadd.f32 %v1770_v29, %v1746_v30  ;;  %1849 = vrot.lane.b32.xlu1 %v1845_v31, %s3303_s24 }
 0x477   : > { %v1806_v39 = vsel %vm3891_vm13, %v3091_v22, 0.0  ;;  %3092 = vtanh.f32 %v1779_v33 }
 0x478   : > { %v1812_v40 = vpack.c.bf16 %v1807_v34, %v1806_v39  ;;  %3094 = vtanh.f32 %v1778_v35 }
 0x47a   : > { %v1841_v47 = vunpack.c.l.b16 %v1812_v40  ;;  %v1842_v26 = vunpack.c.h.b16 %v1812_v40 }
 0x47d   : > { %v3093_v41 = vpop.eup %3092 }
 0x47e   : > { %v3095_v37 = vpop.eup %3094  ;;  %v1809_v43 = vsel %vm3887_vm11, %v3093_v41, 0.0 }
 0x47f   : > { %v1808_v45 = vsel %vm3891_vm13, %v3095_v37, 0.0 }
 0x480   : > { %v1813_v46 = vpack.c.bf16 %v1809_v43, %v1808_v45 }
 0x482   : > { %v1843_v36 = vunpack.c.l.b16 %v1813_v46  ;;  %v1844_v27 = vunpack.c.h.b16 %v1813_v46 }
 0x484   : > { %v1848_v42 = vpack.c.b16 %v1844_v27, %v1842_v26  ;;  %v1847_v49 = vpack.c.b16 %v1843_v36, %v1841_v47 }
 0x486   : > { %1855 = vrot.lane.b32.xlu0 %v1848_v42, %s3303_s24  ;;  %1952 = vmatpush.bf16.msra.mxu1 %v1848_v42 }
 0x487   : > { %1853 = vrot.lane.b32.xlu2 %v1847_v49, %s3303_s24  ;;  %1933 = vmatpush.bf16.msra.mxu0 %v1847_v49 }
 0x488   : > { %1986 = vrot.lane.b32.xlu1 %v1848_v42, %s3304_s25 }
 0x48a   : > { %1953 = vmatpush.bf16.msra.mxu1 %v1846_v50 }
 0x48b   : > { %1934 = vmatpush.bf16.msra.mxu0 %v1845_v31 }
 0x48d   : > { %2821 = vmatmul.msk.bf16.vlgmr.msra.gmra.mxu1 %vm942_vm12, %v2912_v58 }
 0x48e   : > { %1984 = vrot.lane.b32.xlu0 %v1847_v49, %s3304_s25  ;;  %2819 = vmatmul.msk.bf16.vlgmr.msra.gmra.mxu0 %vm942_vm12, %v2912_v58 }
 0x48f   : > { %1851 = vrot.lane.b32.xlu2 %v1846_v50, %s3303_s24 }
 0x490   : > { %2146 = vrot.lane.b32.xlu1 %v1847_v49, %s3306_s30 }
 0x496   : > { %1982 = vrot.lane.b32.xlu0 %v1846_v50, %s3304_s25 }
 0x497   : > { %1980 = vrot.lane.b32.xlu2 %v1845_v31, %s3304_s25 }
 0x498   : > { %2067 = vrot.lane.b32.xlu1 %v1848_v42, %s3305_s27 }
 0x49d   : > { %2822 = vmatmul.msk.bf16.gmra.mxu1 %vm942_vm12, %v2913_v61 }
 0x49e   : > { %2065 = vrot.lane.b32.xlu0 %v1847_v49, %s3305_s27  ;;  %2820 = vmatmul.msk.bf16.gmra.mxu0 %vm942_vm12, %v2913_v61  ;;  %v2249_v61 = vstv %s2871_s13 }
 0x49f   : > { %2142 = vrot.lane.b32.xlu2 %v1845_v31, %s3306_s30 }
 0x4a0   : > { %2061 = vrot.lane.b32.xlu1 %v1845_v31, %s3305_s27 }
 0x4a6   : > { %2144 = vrot.lane.b32.xlu0 %v1846_v50, %s3306_s30 }
 0x4a7   : > { %2148 = vrot.lane.b32.xlu2 %v1848_v42, %s3306_s30 }
 0x4a8   : > { %2229 = vperm.xlu1 %3047, %v2211_v55  }
 0x4ae   : > { %2224 = vperm.xlu0 %3046, %v2210_v51  }
 0x4af   : > { %2063 = vrot.lane.b32.xlu2 %v1846_v50, %s3305_s27 }
 0x4b6   : > { %2219 = vperm.xlu0 %3046, %v2209_v44  }
 0x4b7   : > { %2214 = vperm.xlu2 %3045, %v2208_v56  }
 0x4e1   : > { %v1854_v57 = vpop.permute.xlu2 %1853 }
 0x4e8   : > { %v1850_v48 = vpop.permute.xlu1 %1849 }
 0x4e9   : > { %v1852_v59 = vpop.permute.xlu2 %1851 }
 0x4ea   : > { %v1857_v10 = vsel %vm473_vm3, %v1850_v48, %v1852_v59 }
 0x4f1   : > { %v1981_v60 = vpop.permute.xlu2 %1980 }
 0x4f8   : > { %v1856_v3 = vpop.permute.xlu0 %1855 }
 0x4f9   : > { %v1858_v0 = vsel %vm473_vm3, %v1854_v57, %v1856_v3  ;;  %1894 = vmatpush.bf16.msrb.mxu3 %v1856_v3  ;;  %v2143_v4 = vpop.permute.xlu2 %2142 }
 0x4fa   : > { %v1987_v6 = vpop.permute.xlu1 %1986  ;;  %1875 = vmatpush.bf16.msrb.mxu2 %v1858_v0 }
 0x4fd   : > { %1895 = vmatpush.bf16.msrb.mxu3 %v1852_v59 }
 0x4fe   : > { %1876 = vmatpush.bf16.msrb.mxu2 %v1857_v10 }
 0x500   : > { %v1985_v11 = vpop.permute.xlu0 %1984  ;;  %2809 = vmatmul.msk.bf16.vlgmr.msrb.gmra.mxu3 %vm942_vm12, %v2914_v8 }
 0x501   : > { %2025 = vmatpush.bf16.msra.mxu3 %v1987_v6  ;;  %v1989_v52 = vsel %vm606_vm4, %v1985_v11, %v1987_v6  ;;  %2807 = vmatmul.msk.bf16.vlgmr.msrb.gmra.mxu2 %vm942_vm12, %v2914_v8  ;;  %v2149_v5 = vpop.permute.xlu2 %2148 }
 0x502   : > { %v2147_v62 = vpop.permute.xlu1 %2146  ;;  %2006 = vmatpush.bf16.msra.mxu2 %v1989_v52 }
 0x503   : > { %v2151_v14 = vsel %vm764_vm5, %v2147_v62, %v2149_v5  ;;  %v2251_v62 = vadd.s32 %v2249_v61, %v3613_v13  ;;  %v2432_v13 = vld [vmem:[%s4209_s28] sm:$0xff] }
 0x505   : > { %vm2253_vm14 = vcmp.ge.s32.totalorder %v2251_v62, 0  ;;  %vm2255_vm15 = vcmp.lt.s32.totalorder %v2251_v62, 256 }
 0x506   : > { %vm4022_vm6 = vmand %vm2253_vm14, %vm2255_vm15 }
 0x508   : > { %v1983_v15 = vpop.permute.xlu0 %1982 }
 0x509   : > { %2026 = vmatpush.bf16.msra.mxu3 %v1983_v15  ;;  %v1988_v16 = vsel %vm606_vm4, %v1981_v60, %v1983_v15  ;;  %v2064_v20 = vpop.permute.xlu2 %2063 }
 0x50a   : > { %v2068_v18 = vpop.permute.xlu1 %2067  ;;  %2007 = vmatpush.bf16.msra.mxu2 %v1988_v16  ;;  %v1955_v33 = vpop.f32.mrf.mxu1 }
 0x50b   : > { %2106 = vmatpush.bf16.msrb.mxu1 %v2068_v18  ;;  %v1936_v22 = vpop.f32.mrf.mxu0 }
 0x50d   : > { %2187 = vmatpush.bf16.msrb.mxu3 %v2149_v5 }
 0x50e   : > { %2168 = vmatpush.bf16.msrb.mxu2 %v2151_v14  ;;  %v2250_v14 = vadd.s32 %v2249_v61, %v3607_v9 }
 0x50f   : > { %2107 = vmatpush.bf16.msrb.mxu1 %v2064_v20 }
 0x510   : > { %v2066_v1 = vpop.permute.xlu0 %2065  ;;  %2810 = vmatmul.msk.bf16.gmra.mxu3 %vm942_vm12, %v2915_v19  ;;  %vm2252_vm0 = vcmp.ge.s32.totalorder %v2250_v14, 0  ;;  %vm2254_vm1 = vcmp.lt.s32.totalorder %v2250_v14, 256 }
 0x511   : > { %v2070_v54 = vsel %vm685_vm2, %v2066_v1, %v2068_v18  ;;  %2808 = vmatmul.msk.bf16.gmra.mxu2 %vm942_vm12, %v2915_v19  ;;  %v2215_v11 = vpop.permute.xlu2 %2214  ;;  %vm4026_vm7 = vmand %vm2252_vm0, %vm2254_vm1 }
 0x512   : > { %v2062_v23 = vpop.permute.xlu1 %2061  ;;  %2087 = vmatpush.bf16.msrb.mxu0 %v2070_v54  ;;  %2853 = vmatmul.msk.bf16.vlgmr.msrb.gmra.mxu1 %vm942_vm12, %v2918_v21  ;;  %v1957_v40 = vpop.f32.mrf.mxu1 }
 0x513   : > { %v2069_v2 = vsel %vm685_vm2, %v2062_v23, %v2064_v20  ;;  %v1938_v37 = vpop.f32.mrf.mxu0 }
 0x516   : > { %2088 = vmatpush.bf16.msrb.mxu0 %v2069_v2 }
 0x518   : > { %v2145_v63 = vpop.permute.xlu0 %2144 }
 0x519   : > { %2188 = vmatpush.bf16.msrb.mxu3 %v2145_v63  ;;  %v2150_v17 = vsel %vm764_vm5, %v2143_v4, %v2145_v63  ;;  %2851 = vmatmul.msk.bf16.vlgmr.msrb.gmra.mxu0 %vm942_vm12, %v2918_v21 }
 0x51a   : > { %2169 = vmatpush.bf16.msrb.mxu2 %v2150_v17  ;;  %v1960_v46 = vpop.f32.mrf.mxu1 }
 0x51b   : > { %v1941_v47 = vpop.f32.mrf.mxu0 }
 0x520   : > { %2837 = vmatmul.msk.bf16.vlgmr.msra.gmra.mxu3 %vm942_vm12, %v2916_v12  ;;  %v4018_v59 = vpop.permute.xlu0 %2224 }
 0x521   : > { %2835 = vmatmul.msk.bf16.vlgmr.msra.gmra.mxu2 %vm942_vm12, %v2916_v12 }
 0x522   : > { %2854 = vmatmul.msk.bf16.gmra.mxu1 %vm942_vm12, %v2919_v24  ;;  %v4009_v27 = vpop.f32.mrf.mxu1 }
 0x523   : > { %v4011_v38 = vpop.f32.mrf.mxu0 }
 0x528   : > { %v2220_v54 = vpop.permute.xlu0 %2219 }
 0x529   : > { %2852 = vmatmul.msk.bf16.gmra.mxu0 %vm942_vm12, %v2919_v24 }
 0x530   : > { %2838 = vmatmul.msk.bf16.gmra.mxu3 %vm942_vm12, %v2917_v28 }
 0x531   : > { %2836 = vmatmul.msk.bf16.gmra.mxu2 %vm942_vm12, %v2917_v28 }
 0x540   : > { %2869 = vmatmul.msk.bf16.vlgmr.msrb.gmra.mxu3 %vm942_vm12, %v2920_v25 }
 0x541   : > { %2867 = vmatmul.msk.bf16.vlgmr.msrb.gmra.mxu2 %vm942_vm12, %v2920_v25 }
 0x550   : > { %2870 = vmatmul.msk.bf16.gmra.mxu3 %vm942_vm12, %v2921_v7 }
 0x551   : > { %2868 = vmatmul.msk.bf16.gmra.mxu2 %vm942_vm12, %v2921_v7 }
 0x583   : > { %v1897_v29 = vpop.f32.mrf.mxu3 }
 0x584   : > { %v1878_v30 = vpop.f32.mrf.mxu2  ;;  %v1956_v51 = vadd.f32 %v1955_v33, %v1897_v29 }
 0x585   : > { %v1937_v56 = vadd.f32 %v1936_v22, %v1878_v30 }
 0x58b   : > { %v1899_v31 = vpop.f32.mrf.mxu3 }
 0x58c   : > { %v1880_v32 = vpop.f32.mrf.mxu2  ;;  %v1958_v6 = vadd.f32 %v1957_v40, %v1899_v31 }
 0x58d   : > { %v1939_v52 = vadd.f32 %v1938_v37, %v1880_v32 }
 0x58f   : > { %v2109_v53 = vpop.f32.mrf.mxu1 }
 0x593   : > { %v1902_v34 = vpop.f32.mrf.mxu3 }
 0x594   : > { %v1883_v35 = vpop.f32.mrf.mxu2  ;;  %v1961_v23 = vadd.f32 %v1960_v46, %v1902_v34 }
 0x595   : > { %v1942_v9 = vadd.f32 %v1941_v47, %v1883_v35 }
 0x596   : > { %v2090_v50 = vpop.f32.mrf.mxu0 }
 0x597   : > { %v2111_v48 = vpop.f32.mrf.mxu1 }
 0x59b   : > { %v4005_v39 = vpop.f32.mrf.mxu3 }
 0x59c   : > { %v4007_v41 = vpop.f32.mrf.mxu2 }
 0x59e   : > { %v2092_v0 = vpop.f32.mrf.mxu0 }
 0x59f   : > { %v2114_v17 = vpop.f32.mrf.mxu1 }
 0x5a3   : > { %v2028_v43 = vpop.f32.mrf.mxu3 }
 0x5a4   : > { %v2009_v45 = vpop.f32.mrf.mxu2  ;;  %v2039_v57 = vadd.f32 %v2028_v43, %v1956_v51  ;;  %v1963_v43 = vadd.f32 %v4009_v27, %v4005_v39 }
 0x5a5   : > { %v2038_v58 = vadd.f32 %v2009_v45, %v1937_v56  ;;  %v1944_v45 = vadd.f32 %v4011_v38, %v4007_v41 }
 0x5a6   : > { %v2120_v60 = vadd.f32 %v2109_v53, %v2039_v57  ;;  %v2095_v12 = vpop.f32.mrf.mxu0 }
 0x5a7   : > { %v2119_v3 = vadd.f32 %v2090_v50, %v2038_v58  ;;  %v2116_v51 = vpop.f32.mrf.mxu1 }
 0x5ab   : > { %v2030_v26 = vpop.f32.mrf.mxu3 }
 0x5ac   : > { %v2011_v36 = vpop.f32.mrf.mxu2  ;;  %v2041_v15 = vadd.f32 %v2030_v26, %v1958_v6 }
 0x5ad   : > { %v2040_v18 = vadd.f32 %v2011_v36, %v1939_v52 }
 0x5ae   : > { %v2122_v20 = vadd.f32 %v2111_v48, %v2041_v15  ;;  %v2097_v56 = vpop.f32.mrf.mxu0 }
 0x5af   : > { %v2121_v21 = vadd.f32 %v2092_v0, %v2040_v18 }
 0x5b3   : > { %v2033_v42 = vpop.f32.mrf.mxu3 }
 0x5b4   : > { %v2014_v49 = vpop.f32.mrf.mxu2  ;;  %v2043_v7 = vadd.f32 %v2033_v42, %v1961_v23 }
 0x5b5   : > { %v2042_v31 = vadd.f32 %v2014_v49, %v1942_v9 }
 0x5b6   : > { %v2124_v35 = vadd.f32 %v2114_v17, %v2043_v7 }
 0x5b7   : > { %v2123_v40 = vadd.f32 %v2095_v12, %v2042_v31  ;;  %v2274_v12 = vld [vmem:[#allocation5] sm:$0xf] }
 0x5bb   : > { %v4013_v55 = vpop.f32.mrf.mxu3 }
 0x5bc   : > { %v4015_v44 = vpop.f32.mrf.mxu2  ;;  %v2045_v42 = vadd.f32 %v4013_v55, %v1963_v43  ;;  %v2340_v43 = vld [vmem:[#allocation5 + $0x8] sm:$0xf] }
 0x5bd   : > { %v2044_v49 = vadd.f32 %v4015_v44, %v1944_v45 }
 0x5be   : > { %v2126_v38 = vadd.f32 %v2116_v51, %v2045_v42 }
 0x5bf   : > { %v2125_v55 = vadd.f32 %v2097_v56, %v2044_v49 }
 0x5c3   : > { %v2190_v4 = vpop.f32.mrf.mxu3 }
 0x5c4   : > { %v2201_v8 = vadd.f32 %v2190_v4, %v2120_v60  ;;  %v2171_v10 = vpop.f32.mrf.mxu2  ;;  %v2230_v4 = vpop.permute.xlu1 %2229 }
 0x5c5   : > { %v2200_v5 = vadd.f32 %v2171_v10, %v2119_v3 }
 0x5c6   : > { %v2233_v16 = vadd.f32 %v2215_v11, %v2201_v8 }
 0x5c7   : > { %v2232_v19 = vadd.f32 %v2215_v11, %v2200_v5 }
 0x5c8   : > { %3096 = vtanh.f32 %v2233_v16 }
 0x5c9   : > { %3098 = vtanh.f32 %v2232_v19 }
 0x5cb   : > { %v2192_v1 = vpop.f32.mrf.mxu3 }
 0x5cc   : > { %v2203_v2 = vadd.f32 %v2192_v1, %v2122_v20  ;;  %v2173_v63 = vpop.f32.mrf.mxu2 }
 0x5cd   : > { %v2202_v28 = vadd.f32 %v2173_v63, %v2121_v21 }
 0x5ce   : > { %v3097_v25 = vpop.eup %3096  ;;  %v2235_v29 = vadd.f32 %v2220_v54, %v2203_v2 }
 0x5cf   : > { %v3099_v30 = vpop.eup %3098  ;;  %v2263_v32 = vsel %vm4022_vm6, %v3097_v25, 0.0  ;;  %v2234_v33 = vadd.f32 %v2220_v54, %v2202_v28 }
 0x5d0   : > { %v2262_v22 = vsel %vm4026_vm7, %v3099_v30, 0.0  ;;  %3100 = vtanh.f32 %v2235_v29 }
 0x5d1   : > { %v2270_v34 = vpack.c.bf16 %v2263_v32, %v2262_v22  ;;  %3102 = vtanh.f32 %v2234_v33 }
 0x5d3   : > { %v2195_v37 = vpop.f32.mrf.mxu3  ;;  %v2281_v58 = vunpack.c.l.b16 %v2270_v34  ;;  %v2282_v48 = vunpack.c.h.b16 %v2270_v34 }
 0x5d4   : > { %v2205_v46 = vadd.f32 %v2195_v37, %v2124_v35  ;;  %v2176_v47 = vpop.f32.mrf.mxu2  ;;  %v2276_v37 = vld [vmem:[#allocation5 + $0x4] sm:$0xf] }
 0x5d5   : > { %v2204_v26 = vadd.f32 %v2176_v47, %v2123_v40 }
 0x5d6   : > { %v3101_v36 = vpop.eup %3100  ;;  %v2237_v53 = vadd.f32 %v4018_v59, %v2205_v46 }
 0x5d7   : > { %v3103_v50 = vpop.eup %3102  ;;  %v2265_v57 = vsel %vm4022_vm6, %v3101_v36, 0.0  ;;  %v2236_v39 = vadd.f32 %v4018_v59, %v2204_v26  ;;  %v2371_v36 = vld [vmem:[#allocation5 + $0xc] sm:$0xf] }
 0x5d8   : > { %v2264_v41 = vsel %vm4026_vm7, %v3103_v50, 0.0  ;;  %3104 = vtanh.f32 %v2237_v53 }
 0x5d9   : > { %v2271_v27 = vpack.c.bf16 %v2265_v57, %v2264_v41  ;;  %3106 = vtanh.f32 %v2236_v39  ;;  %v2402_v57 = vld [vmem:[#allocation5 + $0x10] sm:$0xf] }
 0x5db   : > { %v2283_v44 = vunpack.c.l.b16 %v2271_v27  ;;  %v2197_v60 = vpop.f32.mrf.mxu3  ;;  %v2284_v61 = vunpack.c.h.b16 %v2271_v27 }
 0x5dc   : > { %v2207_v3 = vadd.f32 %v2197_v60, %v2126_v38  ;;  %v2178_v0 = vpop.f32.mrf.mxu2 }
 0x5dd   : > { %v2206_v6 = vadd.f32 %v2178_v0, %v2125_v55  ;;  %v2290_v8 = vpack.c.b16 %v2284_v61, %v2282_v48  ;;  %v2289_v10 = vpack.c.b16 %v2283_v44, %v2281_v58 }
 0x5de   : > { %v3105_v59 = vpop.eup %3104  ;;  %v2239_v11 = vadd.f32 %v2230_v4, %v2207_v3 }
 0x5df   : > { %v3107_v52 = vpop.eup %3106  ;;  %v2267_v62 = vsel %vm4022_vm6, %v3105_v59, 0.0  ;;  %v2238_v5 = vadd.f32 %v2230_v4, %v2206_v6  ;;  %2295 = vrot.lane.b32.xlu1 %v2290_v8, %s3303_s24  ;;  %2372 = vrot.lane.b32.xlu2 %v2289_v10, %s3305_s27 }
 0x5e0   : > { %v2266_v15 = vsel %vm4026_vm7, %v3107_v52, 0.0  ;;  %3108 = vtanh.f32 %v2239_v11  ;;  %2293 = vrot.lane.b32.xlu0 %v2289_v10, %s3303_s24 }
 0x5e1   : > { %v2272_v16 = vpack.c.bf16 %v2267_v62, %v2266_v15  ;;  %3110 = vtanh.f32 %v2238_v5 }
 0x5e3   : > { %v2285_v1 = vunpack.c.l.b16 %v2272_v16  ;;  %v2286_v23 = vunpack.c.h.b16 %v2272_v16 }
 0x5e6   : > { %v3109_v14 = vpop.eup %3108 }
 0x5e7   : > { %v3111_v18 = vpop.eup %3110  ;;  %v2269_v19 = vsel %vm4022_vm6, %v3109_v14, 0.0  ;;  %2343 = vrot.lane.b32.xlu1 %v2290_v8, %s3304_s25 }
 0x5e8   : > { %v2268_v20 = vsel %vm4026_vm7, %v3111_v18, 0.0  ;;  %2341 = vrot.lane.b32.xlu0 %v2289_v10, %s3304_s25 }
 0x5e9   : > { %v2273_v21 = vpack.c.bf16 %v2269_v19, %v2268_v20 }
 0x5eb   : > { %v2287_v54 = vunpack.c.l.b16 %v2273_v21  ;;  %v2288_v2 = vunpack.c.h.b16 %v2273_v21 }
 0x5ed   : > { %v2291_v63 = vpack.c.b16 %v2287_v54, %v2285_v1  ;;  %v2292_v9 = vpack.c.b16 %v2288_v2, %v2286_v23 }
 0x5ef   : > { %2332 = vmatpush.bf16.msra.mxu1 %v2291_v63  ;;  %2297 = vrot.lane.b32.xlu1 %v2291_v63, %s3303_s24 }
 0x5f0   : > { %2299 = vrot.lane.b32.xlu2 %v2292_v9, %s3303_s24  ;;  %2347 = vrot.lane.b32.xlu0 %v2292_v9, %s3304_s25 }
 0x5f3   : > { %2333 = vmatpush.bf16.msra.mxu1 %v2289_v10 }
 0x5f6   : > { %2873 = vmatmul.msk.bf16.vlgmr.msra.gmra.mxu1 %vm942_vm12, %v2274_v12 }
 0x5f7   : > { %2376 = vrot.lane.b32.xlu1 %v2291_v63, %s3305_s27 }
 0x5f8   : > { %2345 = vrot.lane.b32.xlu2 %v2291_v63, %s3304_s25  ;;  %2374 = vrot.lane.b32.xlu0 %v2290_v8, %s3305_s27  ;;  %s4210_s25 = sld [smem:[#allocation13_spill]] }
 0x5ff   : > { %2407 = vrot.lane.b32.xlu1 %v2291_v63, %s3306_s30 }
 0x600   : > { %2378 = vrot.lane.b32.xlu2 %v2292_v9, %s3305_s27  ;;  %2403 = vrot.lane.b32.xlu0 %v2289_v10, %s3306_s30  ;;  %s4211_s27 = sld [smem:[#allocation12_spill]] }
 0x606   : > { %s433_s11 = sand.u32 1, %s4211_s27  }
 0x607   : > { %2405 = vrot.lane.b32.xlu1 %v2290_v8, %s3306_s30  ;;  %s2561_s4 = sshll.u32 %s433_s11, 3 }
 0x608   : > { %2409 = vrot.lane.b32.xlu2 %v2292_v9, %s3306_s30  ;;  %s2878_s30 = sshll.u32 %s4210_s25, 1  ;;  %s435_s3 = scalar_lea.vmem [#allocation7], %s2561_s4 }
 0x609   : > { %s2451_s18 = sadd.s32 %s3282_s23, %s2878_s30  ;;  %s2455_s24 = sshll.u32 %s435_s3, 4  ;;  %s2456_s24 = int_to_ptr.vmem [resolvable:$true] %s2455_s24 }
 0x60a   : > { %s2879_s8 = sshll.u32 %s2451_s18, 3  ;;  %s2441_s23 = scalar_lea.sflag [#allocation4], %s433_s11 }
 0x60b   : > { %s2453_s17 = scalar_lea.hbm %s4212_s29, %s2879_s8  ;;  %s3192_s4 = scalar_lea.hbm %s4212_s29, 32 }
 0x60c   : > { %s2457_s28 = sshll.u32 %s2453_s17, 4  ;;  %s2458_s28 = int_to_ptr.hbm [resolvable:$true] %s2457_s28 }
 0x60d   : > { %s3186_s25 = sshra.s32 %s2458_s28, 4  ;;  %s3187_s25 = int_to_ptr.hbm [resolvable:$true] %s3186_s25 }
 0x60e   : > { %s3188_s27 = scalar_lea.hbm %s3187_s25, 8  ;;  %p3193_p1 = scmp.lt.s32.totalorder %s3187_s25, %s4212_s29 }
 0x60f   : > { %p3189_p0 = scmp.ne.s32.totalorder %s3187_s25, %s3188_s27  ;;  %p3194_p2 = scmp.lt.s32.totalorder %s3192_s4, %s3188_s27 }
 0x610   : > { %2435 = vperm.xlu2 %3045, %v2432_v13  }
 0x611   : > { %p3190_p9 = pnand %p3189_p0, %p3434_p6  ;;  %p3195_p3 = por %p3194_p2, %p3193_p1 }
 0x613   : > { %p3191_p13 = pneg %p3190_p9 }
 0x615   : > { %p3196_p4 = pnand %p3195_p3, %p3191_p13 }
 0x639   : > { %v2373_v17 = vpop.permute.xlu2 %2372 }
 0x64a   : > { %v2300_v25 = vpop.permute.xlu2 %2299 }
 0x651   : > { %v2296_v24 = vpop.permute.xlu1 %2295 }
 0x652   : > { %v2294_v28 = vpop.permute.xlu0 %2293  ;;  %v2346_v30 = vpop.permute.xlu2 %2345 }
 0x653   : > { %v2301_v34 = vsel %vm473_vm3, %v2294_v28, %v2296_v24 }
 0x659   : > { %v2344_v7 = vpop.permute.xlu1 %2343 }
 0x65a   : > { %v2342_v29 = vpop.permute.xlu0 %2341  ;;  %v2379_v35 = vpop.permute.xlu2 %2378 }
 0x65b   : > { %v2349_v40 = vsel %vm606_vm4, %v2342_v29, %v2344_v7 }
 0x661   : > { %v2298_v31 = vpop.permute.xlu1 %2297 }
 0x662   : > { %v2302_v32 = vsel %vm473_vm3, %v2298_v31, %v2300_v25  ;;  %v2348_v33 = vpop.permute.xlu0 %2347  ;;  %v2410_v42 = vpop.permute.xlu2 %2409 }
 0x663   : > { %v2350_v22 = vsel %vm606_vm4, %v2346_v30, %v2348_v33  ;;  %2314 = vmatpush.bf16.msra.mxu0 %v2302_v32 }
 0x664   : > { %2362 = vmatpush.bf16.msra.mxu2 %v2350_v22 }
 0x667   : > { %2315 = vmatpush.bf16.msra.mxu0 %v2301_v34 }
 0x668   : > { %2363 = vmatpush.bf16.msra.mxu2 %v2349_v40 }
 0x669   : > { %v2377_v45 = vpop.permute.xlu1 %2376 }
 0x66a   : > { %v2381_v46 = vsel %vm685_vm2, %v2377_v45, %v2379_v35  ;;  %2872 = vmatmul.msk.bf16.vlgmr.msra.gmra.mxu0 %vm942_vm12, %v2276_v37  ;;  %v2375_v47 = vpop.permute.xlu0 %2374  ;;  %v2436_v4 = vpop.permute.xlu2 %2435 }
 0x66b   : > { %2393 = vmatpush.bf16.msra.mxu3 %v2381_v46  ;;  %2874 = vmatmul.msk.bf16.vlgmr.msra.gmra.mxu2 %vm942_vm12, %v2340_v43  ;;  %v2380_v26 = vsel %vm685_vm2, %v2373_v17, %v2375_v47 }
 0x66f   : > { %2394 = vmatpush.bf16.msra.mxu3 %v2380_v26 }
 0x671   : > { %v2408_v49 = vpop.permute.xlu1 %2407 }
 0x672   : > { %v2412_v53 = vsel %vm764_vm5, %v2408_v49, %v2410_v42  ;;  %2875 = vmatmul.msk.bf16.vlgmr.msra.gmra.mxu3 %vm942_vm12, %v2371_v36  ;;  %v2404_v50 = vpop.permute.xlu0 %2403 }
 0x673   : > { %2424 = vmatpush.bf16.msrb.mxu0 %v2412_v53  ;;  %v2335_v39 = vpop.f32.mrf.mxu1 }
 0x679   : > { %v2406_v51 = vpop.permute.xlu1 %2405 }
 0x67a   : > { %v2411_v56 = vsel %vm764_vm5, %v2404_v50, %v2406_v51 }
 0x67b   : > { %2425 = vmatpush.bf16.msrb.mxu0 %v2411_v56  ;;  %v2337_v41 = vpop.f32.mrf.mxu1 }
 0x67e   : > { %2876 = vmatmul.msk.bf16.vlgmr.msrb.gmra.mxu0 %vm942_vm12, %v2402_v57 }
 0x6e7   : > { %v2317_v27 = vpop.f32.mrf.mxu0 }
 0x6e8   : > { %v2336_v58 = vadd.f32 %v2335_v39, %v2317_v27 }
 0x6ee   : > { %v2365_v38 = vpop.f32.mrf.mxu2 }
 0x6ef   : > { %v2319_v55 = vpop.f32.mrf.mxu0  ;;  %v2369_v48 = vadd.f32 %v2365_v38, %v2336_v58 }
 0x6f5   : > { %v2396_v44 = vpop.f32.mrf.mxu3 }
 0x6f6   : > { %v2367_v60 = vpop.f32.mrf.mxu2  ;;  %v2400_v61 = vadd.f32 %v2396_v44, %v2369_v48 }
 0x6fb   : > { %v2427_v3 = vpop.f32.mrf.mxu0 }
 0x6fc   : > { %v2431_v0 = vadd.f32 %v2427_v3, %v2400_v61 }
 0x6fd   : > { %v2398_v6 = vpop.f32.mrf.mxu3 }
 0x6fe   : > { %v2438_v8 = vadd.f32 %v2436_v4, %v2431_v0 }
 0x700   : > { %2439 = vst [vmem:[%s435_s3] sm:$0xff] %v2438_v8 }
 0x701   : > { %3199 = shalt.err (!%p3196_p4)
}
 0x702   : > { %2931 = dma.vmem_to_hbm [thread:$0]  (%p3434_p6), %s2456_s24, 128, %s2458_s28, %s2441_s23  }
 0x703   : > { %v2429_v10 = vpop.f32.mrf.mxu0 }
 0x704 PF: > { %s4214_s11 = sld [smem:[#allocation15_spill]] }
 0x705   : > { %s4215_s16 = sld [smem:[#allocation11_spill]] }
 0x70a   : > { %p2948_p5 = scmp.ge.s32.totalorder %s4214_s11, 2 }
 0x70b   : > { %s2469_s3 = sand.u32 1, %s4215_s16  }
 0x70c   : > { %p2942_p7 = pnand %p2948_p5, %p3439_p8  ;;  %s2470_s30 = scalar_lea.sflag [#allocation4], %s2469_s3 }
 0x70e   : > { %p2943_p10 = pneg %p2942_p7 }
 0x710   : > { %3253 = dma.done.wait (%p2943_p10), %s2470_s30, 128  }
 0x711   : > { %3255 = vsyncadd (%p2943_p10), %s2470_s30, 4294967168  ;;  %s28_s27 = sadd.s32 1, %s4214_s11   ;;  %s4217_s17 = sld [smem:[#allocation12_spill]] }
 0x712   : > { %p25_p11 = scmp.ge.s32.totalorder %s28_s27, 6   ;;  %s4218_s13 = smov %s3485_s20 }
 0x713   : > { %s4219_s23 = sld [smem:[#allocation14_spill]]  ;;  %s4222_s18 = smov %s3266_s19 }
 0x714   : > { %s4220_s25 = sld [smem:[#allocation18_spill]]  ;;  %s4223_s19 = smov %s3488_s15 }
 0x715   : > { %s4221_s28 = sld [smem:[#allocation19_spill]]  ;;  %s4224_s20 = smov %s3274_s21 }
 0x716   : > { %s4225_s21 = smov %s3278_s22  ;;  %s4226_s22 = smov %s4218_s13 }
 0x717   : > { %s4227_s24 = smov %s3294_s26  ;;  %27 = sbr.rel (!%p25_p11) target bundleno = 18 (0x12), region = 134 }
 0x71b   : > { %s4228_s26 = smov %s4221_s28 }
 0x71c   :  { %2476 = vsyncpa [#allocation3], 1 }
 0x71d   :  { %2478 = vsyncpa [#allocation3 + $0x1], 1 }
 0x71e   :  { %2479 = vsyncpa [#allocation6], 1 }
 0x71f   :  { %2480 = vsyncpa [#allocation4], 1 }
 0x720   :  { %2482 = vsyncpa [#allocation4 + $0x1], 1 }

</bundles_post_ra>
